<compile_context>
chip_gen: v6e
topology: v6e:2x2x1
jax: 0.10.0
libtpu: 0.0.40
codegen_flags: <defaults>
</compile_context>

<pallas_src>
import jax
import jax.numpy as jnp
from jax.experimental import pallas as pl
from jax.experimental.pallas import tpu as pltpu

LANE = 128


def _round_up(v, m):
    return ((v + m - 1) // m) * m


def mlp_kernel(x_ref, w0_ref, b0_ref, w1_ref, b1_ref, w2_ref, b2_ref, o_ref):
    # layer 0: Linear -> ReLU (dropout is identity at inference, norm=None)
    # bf16 operands on the MXU (cast done in-kernel, free VPU op), f32 accum.
    x = x_ref[...].astype(jnp.bfloat16)
    h = jnp.dot(x, w0_ref[...], preferred_element_type=jnp.float32)
    h = jnp.maximum(h + b0_ref[...], 0.0)
    # layer 1: Linear -> ReLU
    h = jnp.dot(h.astype(jnp.bfloat16), w1_ref[...],
                preferred_element_type=jnp.float32)
    h = jnp.maximum(h + b1_ref[...], 0.0)
    # final layer: plain Linear (no activation / norm / dropout)
    out = jnp.dot(h.astype(jnp.bfloat16), w2_ref[...],
                  preferred_element_type=jnp.float32)
    o_ref[...] = (out + b2_ref[...]).astype(o_ref.dtype)


def prepare_params(params):
    """One-time padding + bf16 cast of the weights (hoisted out of forward).

    Hidden dims are zero-padded to a lane-dense 128 (zero weight rows/cols and
    biases keep the math bit-identical; ReLU(0)=0). Input dim (32) and the
    class dim (8) are left at their true sizes.
    """
    (w0, b0), (w1, b1), (w2, b2) = params
    F, H0 = w0.shape
    H1 = w1.shape[1]
    C = w2.shape[1]
    H0p = _round_up(H0, LANE)
    H1p = _round_up(H1, LANE)

    w0p = jnp.pad(w0, ((0, 0), (0, H0p - H0))).astype(jnp.bfloat16)   # (F,   H0p)
    b0p = jnp.pad(b0, ((0, 0), (0, H0p - H0))).astype(jnp.float32)    # (1,   H0p)
    w1p = jnp.pad(w1, ((0, H0p - H0), (0, H1p - H1))).astype(jnp.bfloat16)  # (H0p, H1p)
    b1p = jnp.pad(b1, ((0, 0), (0, H1p - H1))).astype(jnp.float32)    # (1,   H1p)
    w2p = jnp.pad(w2, ((0, H1p - H1), (0, 0))).astype(jnp.bfloat16)   # (H1p, C)
    b2p = b2.astype(jnp.float32)                                      # (1,   C)
    return (w0p, b0p, w1p, b1p, w2p, b2p)


def _choose_tile_m(N, requested):
    # Large tiles amortize the ~0.35us per-grid-step overhead; cap at ceil(N/2)
    # so the grid always has >=2 steps (v7x megacore sharding + double
    # buffering). Round to 16 rows (bf16 sublane packing of the cast x tile).
    half = _round_up(max(1, (N + 1) // 2), 16)
    return max(16, min(_round_up(requested, 16), half))


def universal_mlp_forward(x, prepared_params, *, tile_m=2048):
    """Fused 3-layer MLP forward. x: (N, input_dim) float32, any N."""
    w0p, b0p, w1p, b1p, w2p, b2p = prepared_params
    N, F = x.shape
    assert w0p.shape[0] == F
    H0p, H1p, C = w0p.shape[1], w1p.shape[1], w2p.shape[1]

    tm = _choose_tile_m(N, tile_m)
    grid = (pl.cdiv(N, tm),)   # partial last block is masked by Pallas

    def resident(arr):
        # weights / biases live in VMEM for the whole grid (constant index map)
        ndim = arr.ndim
        return pl.BlockSpec(arr.shape, lambda i: (0,) * ndim)

    flops = 2 * N * (F * H0p + H0p * H1p + H1p * C)
    bytes_accessed = (
        N * F * 4                                        # x read (f32)
        + N * C * 4                                      # out write (f32)
        + (w0p.size + w1p.size + w2p.size) * 2           # bf16 weights
        + (b0p.size + b1p.size + b2p.size) * 4           # f32 biases
    )

    return pl.pallas_call(
        mlp_kernel,
        out_shape=jax.ShapeDtypeStruct((N, C), x.dtype),
        grid_spec=pltpu.PrefetchScalarGridSpec(
            num_scalar_prefetch=0,
            grid=grid,
            in_specs=[
                pl.BlockSpec((tm, F), lambda i: (i, 0)),   # F == full array dim
                resident(w0p), resident(b0p),
                resident(w1p), resident(b1p),
                resident(w2p), resident(b2p),
            ],
            out_specs=pl.BlockSpec((tm, C), lambda i: (i, 0)),  # C == full dim
        ),
        compiler_params=pltpu.CompilerParams(
            dimension_semantics=("parallel",),
        ),
        cost_estimate=pl.CostEstimate(
            flops=flops, transcendentals=0, bytes_accessed=bytes_accessed),
    )(x, w0p, b0p, w1p, b1p, w2p, b2p)


def init_params(key, dims):
    """Deterministic Kaiming-uniform-style init, weights stored as (in, out)."""
    params = []
    for i in range(len(dims) - 1):
        fan_in, fan_out = dims[i], dims[i + 1]
        key, kw, kb = jax.random.split(key, 3)
        bound = 1.0 / jnp.sqrt(fan_in)
        w = jax.random.uniform(kw, (fan_in, fan_out), jnp.float32, -bound, bound)
        b = jax.random.uniform(kb, (1, fan_out), jnp.float32, -bound, bound)
        params.append((w, b))
    return params


def reference_forward(x, params, matmul_dtype=jnp.float32):
    """Pure-JAX reference; matmul_dtype=bf16 mirrors the kernel's MXU numerics."""
    (w0, b0), (w1, b1), (w2, b2) = params

    def mm(a, w):
        a = a.astype(matmul_dtype).astype(jnp.float32)
        w = w.astype(matmul_dtype).astype(jnp.float32)
        return jnp.dot(a, w, precision=jax.lax.Precision.HIGHEST)

    h = jnp.maximum(mm(x, w0) + b0, 0.0)
    h = jnp.maximum(mm(h, w1) + b1, 0.0)
    return mm(h, w2) + b2


if __name__ == "__main__":
    # UniversalMLP(num_layers=3, input_dim=32, hidden_dimension=32,
    #              num_classes=8, dropout=0.5, norm=None)
    # -> channel_list = [32, 32, 32, 8]; dropout/norm are identity at inference.
    num_layers, input_dim, hidden_dim, num_classes = 3, 32, 32, 8
    dims = [input_dim] + [hidden_dim] * (num_layers - 1) + [num_classes]

    key = jax.random.PRNGKey(0)
    kx, kp = jax.random.split(key)
    # Non-multiple-of-tile batch to exercise the masked partial last block;
    # tile_m is capped at ceil(N/2) -> grid=(2,), so the pipeline
    # double-buffers and v7x shards the batch across both TensorCores.
    N = 1000
    x = jax.random.normal(kx, (N, input_dim), jnp.float32)
    params = init_params(kp, dims)

    # Padding / bf16 cast of weights happens exactly once, outside the forward.
    prepared = prepare_params(params)

    fwd = jax.jit(lambda xx: universal_mlp_forward(xx, prepared, tile_m=2048))
    out = jax.block_until_ready(fwd(x))
    assert out.shape == (N, num_classes)

    # Strict check against a reference that mirrors the kernel's bf16-operand /
    # f32-accumulate numerics, plus a loose sanity check against full f32.
    ref_bf16 = reference_forward(x, params, matmul_dtype=jnp.bfloat16)
    ref_f32 = reference_forward(x, params, matmul_dtype=jnp.float32)
    assert jnp.allclose(out, ref_bf16, atol=1e-2, rtol=1e-2)
    assert jnp.allclose(out, ref_f32, atol=5e-2, rtol=5e-2)

    print("KERNEL_OK")
</pallas_src>

<mosaic_0001>
module attributes {stable_mosaic.version = 11 : i64} {
  func.func @mlp_kernel(%arg0: i32, %arg1: memref<512x32xf32, #tpu.memory_space<vmem>>, %arg2: memref<32x128xbf16, #tpu.memory_space<vmem>>, %arg3: memref<1x128xf32, #tpu.memory_space<vmem>>, %arg4: memref<128x128xbf16, #tpu.memory_space<vmem>>, %arg5: memref<1x128xf32, #tpu.memory_space<vmem>>, %arg6: memref<128x8xbf16, #tpu.memory_space<vmem>>, %arg7: memref<1x8xf32, #tpu.memory_space<vmem>>, %arg8: memref<512x8xf32, #tpu.memory_space<vmem>>) attributes {dimension_semantics = [#tpu.dimension_semantics<parallel>], iteration_bounds = array<i64: 2>, scalar_prefetch = 0 : i64, scratch_operands = 0 : i64, tpu.core_type = #tpu.core_type<tc>, window_params = [{transform_indices = @transform_0, window_bounds = array<i64: 512, 32>}, {pipeline_mode = #tpu.pipeline_mode<synchronous>, transform_indices = @transform_1, window_bounds = array<i64: 32, 128>}, {pipeline_mode = #tpu.pipeline_mode<synchronous>, transform_indices = @transform_2, window_bounds = array<i64: 1, 128>}, {pipeline_mode = #tpu.pipeline_mode<synchronous>, transform_indices = @transform_3, window_bounds = array<i64: 128, 128>}, {pipeline_mode = #tpu.pipeline_mode<synchronous>, transform_indices = @transform_4, window_bounds = array<i64: 1, 128>}, {pipeline_mode = #tpu.pipeline_mode<synchronous>, transform_indices = @transform_5, window_bounds = array<i64: 128, 8>}, {pipeline_mode = #tpu.pipeline_mode<synchronous>, transform_indices = @transform_6, window_bounds = array<i64: 1, 8>}, {transform_indices = @transform_7, window_bounds = array<i64: 512, 8>}]} {
    %c0 = arith.constant 0 : index
    %c0_0 = arith.constant 0 : index
    %0 = vector.load %arg1[%c0, %c0_0] : memref<512x32xf32, #tpu.memory_space<vmem>>, vector<512x32xf32>
    %1 = arith.truncf %0 : vector<512x32xf32> to vector<512x32xbf16>
    %c0_1 = arith.constant 0 : index
    %c0_2 = arith.constant 0 : index
    %2 = vector.load %arg2[%c0_1, %c0_2] : memref<32x128xbf16, #tpu.memory_space<vmem>>, vector<32x128xbf16>
    %cst = arith.constant dense<0.000000e+00> : vector<512x128xf32>
    %3 = tpu.matmul %1, %2, %cst {dimension_numbers = #tpu.dot_dimension_numbers<[1], [0], [0], [1], [0, 0, 1, 1], [], []>} : vector<512x32xbf16>, vector<32x128xbf16>, vector<512x128xf32> -> vector<512x128xf32>
    %c0_3 = arith.constant 0 : index
    %c0_4 = arith.constant 0 : index
    %4 = vector.load %arg3[%c0_3, %c0_4] : memref<1x128xf32, #tpu.memory_space<vmem>>, vector<1x128xf32>
    %5 = vector.broadcast %4 : vector<1x128xf32> to vector<512x128xf32>
    %6 = arith.addf %3, %5 : vector<512x128xf32>
    %cst_5 = arith.constant 0.000000e+00 : f32
    %7 = vector.broadcast %cst_5 : f32 to vector<512x128xf32>
    %8 = arith.maximumf %6, %7 : vector<512x128xf32>
    %9 = arith.truncf %8 : vector<512x128xf32> to vector<512x128xbf16>
    %c0_6 = arith.constant 0 : index
    %c0_7 = arith.constant 0 : index
    %10 = vector.load %arg4[%c0_6, %c0_7] : memref<128x128xbf16, #tpu.memory_space<vmem>>, vector<128x128xbf16>
    %cst_8 = arith.constant dense<0.000000e+00> : vector<512x128xf32>
    %11 = tpu.matmul %9, %10, %cst_8 {dimension_numbers = #tpu.dot_dimension_numbers<[1], [0], [0], [1], [0, 0, 1, 1], [], []>} : vector<512x128xbf16>, vector<128x128xbf16>, vector<512x128xf32> -> vector<512x128xf32>
    %c0_9 = arith.constant 0 : index
    %c0_10 = arith.constant 0 : index
    %12 = vector.load %arg5[%c0_9, %c0_10] : memref<1x128xf32, #tpu.memory_space<vmem>>, vector<1x128xf32>
    %13 = vector.broadcast %12 : vector<1x128xf32> to vector<512x128xf32>
    %14 = arith.addf %11, %13 : vector<512x128xf32>
    %cst_11 = arith.constant 0.000000e+00 : f32
    %15 = vector.broadcast %cst_11 : f32 to vector<512x128xf32>
    %16 = arith.maximumf %14, %15 : vector<512x128xf32>
    %17 = arith.truncf %16 : vector<512x128xf32> to vector<512x128xbf16>
    %c0_12 = arith.constant 0 : index
    %c0_13 = arith.constant 0 : index
    %18 = vector.load %arg6[%c0_12, %c0_13] : memref<128x8xbf16, #tpu.memory_space<vmem>>, vector<128x8xbf16>
    %cst_14 = arith.constant dense<0.000000e+00> : vector<512x8xf32>
    %19 = tpu.matmul %17, %18, %cst_14 {dimension_numbers = #tpu.dot_dimension_numbers<[1], [0], [0], [1], [0, 0, 1, 1], [], []>} : vector<512x128xbf16>, vector<128x8xbf16>, vector<512x8xf32> -> vector<512x8xf32>
    %c0_15 = arith.constant 0 : index
    %c0_16 = arith.constant 0 : index
    %20 = vector.load %arg7[%c0_15, %c0_16] : memref<1x8xf32, #tpu.memory_space<vmem>>, vector<1x8xf32>
    %21 = vector.broadcast %20 : vector<1x8xf32> to vector<512x8xf32>
    %22 = arith.addf %19, %21 : vector<512x8xf32>
    %c0_17 = arith.constant 0 : index
    %c0_18 = arith.constant 0 : index
    %23 = vector.load %arg8[%c0_17, %c0_18] : memref<512x8xf32, #tpu.memory_space<vmem>>, vector<512x8xf32>
    tpu.vector_store %arg8[%c0_17, %c0_18], %22 {strides = array<i32>} : memref<512x8xf32, #tpu.memory_space<vmem>>, vector<512x8xf32>,
    return
  }
  func.func @transform_0(%arg0: i32) -> (i32, i32) {
    %c0_i32 = arith.constant 0 : i32
    %c0_i32_0 = arith.constant 0 : i32
    return %arg0, %c0_i32 : i32, i32
  }
  func.func @transform_1(%arg0: i32) -> (i32, i32) {
    %c0_i32 = arith.constant 0 : i32
    %c0_i32_0 = arith.constant 0 : i32
    %c0_i32_1 = arith.constant 0 : i32
    return %c0_i32, %c0_i32_0 : i32, i32
  }
  func.func @transform_2(%arg0: i32) -> (i32, i32) {
    %c0_i32 = arith.constant 0 : i32
    %c0_i32_0 = arith.constant 0 : i32
    %c0_i32_1 = arith.constant 0 : i32
    return %c0_i32, %c0_i32_0 : i32, i32
  }
  func.func @transform_3(%arg0: i32) -> (i32, i32) {
    %c0_i32 = arith.constant 0 : i32
    %c0_i32_0 = arith.constant 0 : i32
    %c0_i32_1 = arith.constant 0 : i32
    return %c0_i32, %c0_i32_0 : i32, i32
  }
  func.func @transform_4(%arg0: i32) -> (i32, i32) {
    %c0_i32 = arith.constant 0 : i32
    %c0_i32_0 = arith.constant 0 : i32
    %c0_i32_1 = arith.constant 0 : i32
    return %c0_i32, %c0_i32_0 : i32, i32
  }
  func.func @transform_5(%arg0: i32) -> (i32, i32) {
    %c0_i32 = arith.constant 0 : i32
    %c0_i32_0 = arith.constant 0 : i32
    %c0_i32_1 = arith.constant 0 : i32
    return %c0_i32, %c0_i32_0 : i32, i32
  }
  func.func @transform_6(%arg0: i32) -> (i32, i32) {
    %c0_i32 = arith.constant 0 : i32
    %c0_i32_0 = arith.constant 0 : i32
    %c0_i32_1 = arith.constant 0 : i32
    return %c0_i32, %c0_i32_0 : i32, i32
  }
  func.func @transform_7(%arg0: i32) -> (i32, i32) {
    %c0_i32 = arith.constant 0 : i32
    %c0_i32_0 = arith.constant 0 : i32
    return %arg0, %c0_i32 : i32, i32
  }
}

</mosaic_0001>

<bundles_post_ra>
// kernel: _lambda_.1
= control target key start
LH: loop header
LB: loop body
LE: loop exit
PB: predicated region body
PF: predicated region fallthrough
CT: control target
= control target key end

     0   :  { %s2911_s24 = smov 0   ;;  %s2913_s25 = smov 0   ;;  %s3704_s0 = inlined_call_operand.vmem [shape: f32[1000,32], index: 0, kind: input, shape index: {}]   ;;  %s3705_s1 = inlined_call_operand.vmem [shape: bf16[32,128], index: 1, kind: input, shape index: {}]   ;;  %s3706_s2 = inlined_call_operand.vmem [shape: f32[1,128], index: 2, kind: input, shape index: {}]   ;;  %s3707_s3 = inlined_call_operand.vmem [shape: bf16[128,128], index: 3, kind: input, shape index: {}]   ;;  %s3708_s4 = inlined_call_operand.vmem [shape: f32[1,128], index: 4, kind: input, shape index: {}]   ;;  %s3709_s5 = inlined_call_operand.vmem [shape: bf16[128,8], index: 5, kind: input, shape index: {}]   ;;  %s3710_s6 = inlined_call_operand.vmem [shape: f32[1,8], index: 6, kind: input, shape index: {}]   ;;  %s3711_s7 = inlined_call_operand.vmem [shape: f32[1000,8], index: 7, kind: output, shape index: {}]  }
   0x1   :  { %s2915_s26 = smov 0  }
   0x2 LB: > { %s2924_s27 = sadd.s32 4294967295, %s2837_s26   ;;  %s2926_s28 = sadd.s32 1, %s2837_s26   ;;  %s2837_s26 = sphi %s2915_s26, %s3720_s26   ;;  %s2833_s25 = sphi %s2913_s25, %s3719_s25   ;;  %s2829_s24 = sphi %s2911_s24, %s3718_s24  }
   0x3   : > { %s173_s29 = ssub.s32 %s2837_s26, %s2926_s28  ;;  %s176_s30 = sadd.s32 1, %s2833_s25 }
   0x4   : > { %p174_p0 = scmp.eq.s32.totalorder %s173_s29, 0  ;;  %p186_p1 = scmp.ne.s32.totalorder %s2833_s25, %s2829_s24 }
   0x5   : > { %p187_p2 = scmp.eq.s32.totalorder %s2924_s27, 1  ;;  %p2254_p3 = scmp.ge.s32.totalorder %s2837_s26, 1 }
   0x6   : > { %s2934_s8 = scalar_select %p174_p0, %s2833_s25, %s176_s30  }
   0x7   : > { %p2936_p4 = por %p187_p2, %p186_p1  ;;  %p246_p5 = scmp.lt.s32.totalorder %s2837_s26, 3 }
   0x9   : > { %p247_p6 = pnand %p2254_p3, %p246_p5 }
   0xa   : > { %s2944_s12 = sshll.u32 (!%p247_p6), %s2924_s27, 6  ;;  %s278_s26 = sand.u32 (!%p247_p6), 1, %s2829_s24  }
   0xb   : > { %250 = sbr.rel (%p247_p6) target bundleno = 823 (0x337), region = 48  ;;  %p286_p7 = scmp.lt.s32.totalorder (!%p247_p6), %s2944_s12, 124 }
   0xc   : > { %s2255_s29 = sshll.u32 (!%p247_p6), %s278_s26, 9 }
   0xd   : > { %s3305_s11 = scalar_lea.vmem (!%p247_p6), [#allocation2], %s2255_s29  }
  0x10   : > { %v2765_v0 = vld [vmem:[%s3705_s1 + $0x8] sm:$0xff]   ;;  %v2766_v1 = vld [vmem:[%s3705_s1] sm:$0xff]   ;;  %s287_s15 = scalar_select %p286_p7, %s2944_s12, 124  ;;  %v2767_v2 = vld [vmem:[%s3707_s3 + $0x38] sm:$0xff]   ;;  %vm420_vm0 = vcmask 261120   ;;  %vm1718_vm1 = vcmask 64512  }
  0x11   : > { %2445 = vmatprep.subr.bf16.mxu0 %v2765_v0  ;;  %2673 = vmatprep.subr.bf16.mxu1 %v2765_v0  ;;  %v2768_v29 = vld [vmem:[%s3707_s3 + $0x30] sm:$0xff]   ;;  %v2769_v38 = vld [vmem:[%s3707_s3 + $0x28] sm:$0xff]   ;;  %v2770_v40 = vld [vmem:[%s3707_s3 + $0x20] sm:$0xff]   ;;  %s1791_s24 = ssub.s32 (%p2936_p4), 125, %s2944_s12  ;;  %s2328_s13 = sshll.u32 (%p2936_p4), %s2924_s27, 9 }
  0x12   : > { %2446 = vmatpush3.bf16.msra.mxu0 %v2765_v0  ;;  %2675 = vmatpush3.bf16.msra.mxu1 %v2765_v0  ;;  %s2257_s18 = sshll.u32 %s287_s15, 3  ;;  %v2771_v50 = vld [vmem:[%s3707_s3 + $0x18] sm:$0xff]   ;;  %v2772_v57 = vld [vmem:[%s3707_s3 + $0x10] sm:$0xff]   ;;  %p1792_p8 = scmp.lt.s32.totalorder (%p2936_p4), %s1791_s24, 64 }
  0x13   : > { %2447 = vmatprep.subr.bf16.mxu0 %v2766_v1  ;;  %2674 = vmatprep.subr.bf16.mxu1 %v2766_v1  ;;  %s2957_s21 = scalar_lea.vmem %s3704_s0, %s2257_s18  ;;  %s3505_s16 = scalar_lea.vmem (%p2936_p4), %s3711_s7, %s2328_s13  }
  0x14   : > { %v301_v3 = vld [vmem:[%s2957_s21] sm:$0xff]  ;;  %v302_v4 = vld [vmem:[%s2957_s21 + $0x8] sm:$0xff]  ;;  %v303_v5 = vld [vmem:[%s2957_s21 + $0x10] sm:$0xff] }
  0x15   : > { %v365_v6 = vpack.c.bf16 %v302_v4, %v301_v3  ;;  %v304_v7 = vld [vmem:[%s2957_s21 + $0x18] sm:$0xff]  ;;  %v305_v8 = vld [vmem:[%s2957_s21 + $0x20] sm:$0xff]  ;;  %v306_v9 = vld [vmem:[%s2957_s21 + $0x28] sm:$0xff] }
  0x16   : > { %2448 = vmatpush3.bf16.msra.mxu0 %v2766_v1  ;;  %2676 = vmatpush3.bf16.msra.mxu1 %v2766_v1  ;;  %v366_v10 = vpack.c.bf16 %v304_v7, %v303_v5  ;;  %v367_v11 = vpack.c.bf16 %v306_v9, %v305_v8  ;;  %v307_v12 = vld [vmem:[%s2957_s21 + $0x30] sm:$0xff]  ;;  %v308_v13 = vld [vmem:[%s2957_s21 + $0x38] sm:$0xff]  ;;  %v309_v14 = vld [vmem:[%s2957_s21 + $0x40] sm:$0xff] }
  0x17   : > { %2513 = vmatprep.subr.bf16.mxu1 %v2767_v2  ;;  %2449 = vmatprep.mubr.msk.bf16.mxu0 %vm420_vm0, %v365_v6  ;;  %v310_v15 = vld [vmem:[%s2957_s21 + $0x48] sm:$0xff]  ;;  %v368_v16 = vpack.c.bf16 %v308_v13, %v307_v12  ;;  %v333_v18 = vld [vmem:[%s2957_s21 + $0x100] sm:$0xff]  ;;  %v335_v20 = vld [vmem:[%s2957_s21 + $0x110] sm:$0xff] }
  0x18   : > { %v369_v17 = vpack.c.bf16 %v310_v15, %v309_v14  ;;  %v334_v19 = vld [vmem:[%s2957_s21 + $0x108] sm:$0xff]  ;;  %v336_v21 = vld [vmem:[%s2957_s21 + $0x118] sm:$0xff]  ;;  %v337_v24 = vld [vmem:[%s2957_s21 + $0x120] sm:$0xff] }
  0x19   : > { %2450 = vmatmul.mubr.msk.bf16.vlgmr.msra.gmra.mxu0 %vm420_vm0, %v366_v10  ;;  %v381_v22 = vpack.c.bf16 %v334_v19, %v333_v18  ;;  %v382_v23 = vpack.c.bf16 %v336_v21, %v335_v20  ;;  %v338_v25 = vld [vmem:[%s2957_s21 + $0x128] sm:$0xff]  ;;  %v311_v26 = vld [vmem:[%s2957_s21 + $0x50] sm:$0xff]  ;;  %v312_v27 = vld [vmem:[%s2957_s21 + $0x58] sm:$0xff] }
  0x1a   : > { %2453 = vmatprep.mubr.msk.bf16.mxu0 %vm420_vm0, %v367_v11  ;;  %v383_v28 = vpack.c.bf16 %v338_v25, %v337_v24  ;;  %v313_v30 = vld [vmem:[%s2957_s21 + $0x60] sm:$0xff]  ;;  %v314_v31 = vld [vmem:[%s2957_s21 + $0x68] sm:$0xff]  ;;  %v370_v32 = vpack.c.bf16 %v312_v27, %v311_v26  ;;  %v339_v33 = vld [vmem:[%s2957_s21 + $0x130] sm:$0xff] }
  0x1b   : > { %2481 = vmatprep.mubr.msk.bf16.mxu1 %vm420_vm0, %v381_v22  ;;  %v340_v34 = vld [vmem:[%s2957_s21 + $0x138] sm:$0xff]  ;;  %v371_v35 = vpack.c.bf16 %v314_v31, %v313_v30  ;;  %v341_v36 = vld [vmem:[%s2957_s21 + $0x140] sm:$0xff]  ;;  %v342_v37 = vld [vmem:[%s2957_s21 + $0x148] sm:$0xff] }
  0x1c   : > { %2482 = vmatmul.mubr.msk.bf16.vlgmr.msra.gmra.mxu1 %vm420_vm0, %v382_v23  ;;  %v384_v39 = vpack.c.bf16 %v340_v34, %v339_v33  ;;  %v315_v41 = vld [vmem:[%s2957_s21 + $0x70] sm:$0xff]  ;;  %v316_v42 = vld [vmem:[%s2957_s21 + $0x78] sm:$0xff]  ;;  %v317_v43 = vld [vmem:[%s2957_s21 + $0x80] sm:$0xff]  ;;  %v385_v44 = vpack.c.bf16 %v342_v37, %v341_v36 }
  0x1d   : > { %2485 = vmatprep.mubr.msk.bf16.mxu1 %vm420_vm0, %v383_v28  ;;  %2514 = vmatpush3.bf16.msra.mxu1 %v2767_v2  ;;  %v318_v45 = vld [vmem:[%s2957_s21 + $0x88] sm:$0xff]  ;;  %v343_v46 = vld [vmem:[%s2957_s21 + $0x150] sm:$0xff]  ;;  %v344_v47 = vld [vmem:[%s2957_s21 + $0x158] sm:$0xff]  ;;  %v372_v51 = vpack.c.bf16 %v316_v42, %v315_v41 }
  0x1e   : > { %2515 = vmatprep.subr.bf16.mxu1 %v2768_v29  ;;  %v345_v48 = vld [vmem:[%s2957_s21 + $0x160] sm:$0xff]  ;;  %v346_v49 = vld [vmem:[%s2957_s21 + $0x168] sm:$0xff]  ;;  %v373_v52 = vpack.c.bf16 %v318_v45, %v317_v43  ;;  %v319_v53 = vld [vmem:[%s2957_s21 + $0x90] sm:$0xff]  ;;  %v386_v54 = vpack.c.bf16 %v344_v47, %v343_v46 }
  0x1f   : > { %v387_v55 = vpack.c.bf16 %v346_v49, %v345_v48  ;;  %v320_v56 = vld [vmem:[%s2957_s21 + $0x98] sm:$0xff]  ;;  %v321_v58 = vld [vmem:[%s2957_s21 + $0xa0] sm:$0xff]  ;;  %v322_v59 = vld [vmem:[%s2957_s21 + $0xa8] sm:$0xff] }
  0x20   : > { %v374_v60 = vpack.c.bf16 %v320_v56, %v319_v53  ;;  %v347_v61 = vld [vmem:[%s2957_s21 + $0x170] sm:$0xff]  ;;  %v348_v62 = vld [vmem:[%s2957_s21 + $0x178] sm:$0xff]  ;;  %v375_v63 = vpack.c.bf16 %v322_v59, %v321_v58  ;;  %v349_v0 = vld [vmem:[%s2957_s21 + $0x180] sm:$0xff] }
  0x21   : > { %2454 = vmatmul.mubr.msk.bf16.gmra.mxu0 %vm420_vm0, %v368_v16  ;;  %2516 = vmatpush3.bf16.msra.mxu1 %v2768_v29  ;;  %v350_v1 = vld [vmem:[%s2957_s21 + $0x188] sm:$0xff]  ;;  %v388_v3 = vpack.c.bf16 %v348_v62, %v347_v61  ;;  %v323_v5 = vld [vmem:[%s2957_s21 + $0xb0] sm:$0xff]  ;;  %v324_v6 = vld [vmem:[%s2957_s21 + $0xb8] sm:$0xff] }
  0x22   : > { %2457 = vmatprep.mubr.msk.bf16.mxu0 %vm420_vm0, %v369_v17  ;;  %2517 = vmatprep.subr.bf16.mxu1 %v2769_v38  ;;  %v2773_v2 = vld [vmem:[%s3707_s3 + $0x8] sm:$0xff]   ;;  %v389_v4 = vpack.c.bf16 %v350_v1, %v349_v0  ;;  %v325_v7 = vld [vmem:[%s2957_s21 + $0xc0] sm:$0xff]  ;;  %v376_v9 = vpack.c.bf16 %v324_v6, %v323_v5  ;;  %v351_v10 = vld [vmem:[%s2957_s21 + $0x190] sm:$0xff] }
  0x23   : > { %v326_v8 = vld [vmem:[%s2957_s21 + $0xc8] sm:$0xff]  ;;  %v352_v11 = vld [vmem:[%s2957_s21 + $0x198] sm:$0xff]  ;;  %v353_v13 = vld [vmem:[%s2957_s21 + $0x1a0] sm:$0xff] }
  0x24   : > { %2486 = vmatmul.mubr.msk.bf16.gmra.mxu1 %vm420_vm0, %v384_v39  ;;  %v377_v12 = vpack.c.bf16 %v326_v8, %v325_v7  ;;  %v354_v14 = vld [vmem:[%s2957_s21 + $0x1a8] sm:$0xff]  ;;  %v390_v15 = vpack.c.bf16 %v352_v11, %v351_v10  ;;  %v327_v17 = vld [vmem:[%s2957_s21 + $0xd0] sm:$0xff]  ;;  %v328_v18 = vld [vmem:[%s2957_s21 + $0xd8] sm:$0xff] }
  0x25   : > { %2489 = vmatprep.mubr.msk.bf16.mxu1 %vm420_vm0, %v385_v44  ;;  %2518 = vmatpush3.bf16.msra.mxu1 %v2769_v38  ;;  %v391_v16 = vpack.c.bf16 %v354_v14, %v353_v13  ;;  %v329_v19 = vld [vmem:[%s2957_s21 + $0xe0] sm:$0xff]  ;;  %v330_v20 = vld [vmem:[%s2957_s21 + $0xe8] sm:$0xff]  ;;  %v378_v21 = vpack.c.bf16 %v328_v18, %v327_v17  ;;  %v355_v22 = vld [vmem:[%s2957_s21 + $0x1b0] sm:$0xff] }
  0x26   : > { %2519 = vmatprep.subr.bf16.mxu1 %v2770_v40  ;;  %v356_v23 = vld [vmem:[%s2957_s21 + $0x1b8] sm:$0xff]  ;;  %v379_v24 = vpack.c.bf16 %v330_v20, %v329_v19  ;;  %v357_v25 = vld [vmem:[%s2957_s21 + $0x1c0] sm:$0xff]  ;;  %v358_v26 = vld [vmem:[%s2957_s21 + $0x1c8] sm:$0xff] }
  0x27   : > { %v392_v27 = vpack.c.bf16 %v356_v23, %v355_v22  ;;  %v393_v28 = vpack.c.bf16 %v358_v26, %v357_v25  ;;  %v331_v29 = vld [vmem:[%s2957_s21 + $0xf0] sm:$0xff]  ;;  %v332_v30 = vld [vmem:[%s2957_s21 + $0xf8] sm:$0xff]  ;;  %v361_v34 = vld [vmem:[%s2957_s21 + $0x1e0] sm:$0xff] }
  0x28   : > { %v380_v31 = vpack.c.bf16 %v332_v30, %v331_v29  ;;  %v360_v33 = vld [vmem:[%s2957_s21 + $0x1d8] sm:$0xff]  ;;  %v363_v38 = vld [vmem:[%s2957_s21 + $0x1f0] sm:$0xff]  ;;  %v2774_v41 = vld [vmem:[%s3707_s3] sm:$0xff]  }
  0x29   : > { %2458 = vmatmul.mubr.msk.bf16.gmra.mxu0 %vm420_vm0, %v370_v32  ;;  %2520 = vmatpush3.bf16.msra.mxu1 %v2770_v40  ;;  %v359_v32 = vld [vmem:[%s2957_s21 + $0x1d0] sm:$0xff]  ;;  %v364_v39 = vld [vmem:[%s2957_s21 + $0x1f8] sm:$0xff]  ;;  %v3079_v44 = vld [vmem:[%s3706_s2] ss:$0 sm:$0xff] }
  0x2a   : > { %2461 = vmatprep.mubr.msk.bf16.mxu0 %vm420_vm0, %v371_v35  ;;  %2521 = vmatprep.subr.bf16.mxu1 %v2771_v50  ;;  %v362_v35 = vld [vmem:[%s2957_s21 + $0x1e8] sm:$0xff]  ;;  %v394_v36 = vpack.c.bf16 %v360_v33, %v359_v32  ;;  %v396_v40 = vpack.c.bf16 %v364_v39, %v363_v38  ;;  %v2778_v5 = vld [vmem:[%s3709_s5 + $0x20] sm:$0xff]   ;;  %v2780_v25 = vld [vmem:[%s3709_s5 + $0x10] sm:$0xff]  }
  0x2b   : > { %v395_v37 = vpack.c.bf16 %v362_v35, %v361_v34  ;;  %v2777_v59 = vld [vmem:[%s3709_s5 + $0x28] sm:$0xff]  }
  0x2c   : > { %2490 = vmatmul.mubr.msk.bf16.gmra.mxu1 %vm420_vm0, %v386_v54  ;;  %v2781_v35 = vld [vmem:[%s3709_s5 + $0x8] sm:$0xff]  }
  0x2d   : > { %2493 = vmatprep.mubr.msk.bf16.mxu1 %vm420_vm0, %v387_v55  ;;  %2522 = vmatpush3.bf16.msra.mxu1 %v2771_v50  ;;  %v2775_v50 = vld [vmem:[%s3709_s5 + $0x38] sm:$0xff]  }
  0x2e   : > { %2523 = vmatprep.subr.bf16.mxu1 %v2772_v57  ;;  %2593 = vmatprep.subr.bf16.mxu0 %v2775_v50 }
  0x2f   : > { %2594 = vmatpush3.bf16.msra.mxu0 %v2775_v50 }
  0x31   : > { %2462 = vmatmul.mubr.msk.bf16.gmra.mxu0 %vm420_vm0, %v372_v51  ;;  %2524 = vmatpush3.bf16.msra.mxu1 %v2772_v57  ;;  %v2776_v51 = vld [vmem:[%s3709_s5 + $0x30] sm:$0xff]  }
  0x32   : > { %2465 = vmatprep.mubr.msk.bf16.mxu0 %vm420_vm0, %v373_v52  ;;  %2525 = vmatprep.subr.bf16.mxu1 %v2773_v2 }
  0x33   : > { %2595 = vmatprep.subr.bf16.mxu0 %v2776_v51 }
  0x34   : > { %2494 = vmatmul.mubr.msk.bf16.gmra.mxu1 %vm420_vm0, %v388_v3  ;;  %2596 = vmatpush3.bf16.msra.mxu0 %v2776_v51 }
  0x35   : > { %2497 = vmatprep.mubr.msk.bf16.mxu1 %vm420_vm0, %v389_v4  ;;  %2526 = vmatpush3.bf16.msra.mxu1 %v2773_v2 }
  0x36   : > { %2527 = vmatprep.subr.bf16.mxu1 %v2774_v41  ;;  %2597 = vmatprep.subr.bf16.mxu0 %v2777_v59 }
  0x38   : > { %2598 = vmatpush3.bf16.msra.mxu0 %v2777_v59 }
  0x39   : > { %2466 = vmatmul.mubr.msk.bf16.gmra.mxu0 %vm420_vm0, %v374_v60  ;;  %2528 = vmatpush3.bf16.msra.mxu1 %v2774_v41 }
  0x3a   : > { %2469 = vmatprep.mubr.msk.bf16.mxu0 %vm420_vm0, %v375_v63  ;;  %2599 = vmatprep.subr.bf16.mxu0 %v2778_v5 }
  0x3c   : > { %2498 = vmatmul.mubr.msk.bf16.gmra.mxu1 %vm420_vm0, %v390_v15  ;;  %v2779_v15 = vld [vmem:[%s3709_s5 + $0x18] sm:$0xff]   ;;  %2600 = vmatpush3.bf16.msra.mxu0 %v2778_v5 }
  0x3d   : > { %2501 = vmatprep.mubr.msk.bf16.mxu1 %vm420_vm0, %v391_v16  ;;  %2601 = vmatprep.subr.bf16.mxu0 %v2779_v15 }
  0x40   : > { %2602 = vmatpush3.bf16.msra.mxu0 %v2779_v15 }
  0x41   : > { %2470 = vmatmul.mubr.msk.bf16.gmra.mxu0 %vm420_vm0, %v376_v9  ;;  %2603 = vmatprep.subr.bf16.mxu0 %v2780_v25 }
  0x42   : > { %2473 = vmatprep.mubr.msk.bf16.mxu0 %vm420_vm0, %v377_v12 }
  0x44   : > { %2502 = vmatmul.mubr.msk.bf16.gmra.mxu1 %vm420_vm0, %v392_v27  ;;  %2604 = vmatpush3.bf16.msra.mxu0 %v2780_v25 }
  0x45   : > { %2505 = vmatprep.mubr.msk.bf16.mxu1 %vm420_vm0, %v393_v28  ;;  %2605 = vmatprep.subr.bf16.mxu0 %v2781_v35 }
  0x48   : > { %2606 = vmatpush3.bf16.msra.mxu0 %v2781_v35 }
  0x49   : > { %2474 = vmatmul.mubr.msk.bf16.gmra.mxu0 %vm420_vm0, %v378_v21 }
  0x4a   : > { %2477 = vmatprep.mubr.msk.bf16.mxu0 %vm420_vm0, %v379_v24 }
  0x4c   : > { %2506 = vmatmul.mubr.msk.bf16.gmra.mxu1 %vm420_vm0, %v394_v36 }
  0x4d   : > { %2509 = vmatprep.mubr.msk.bf16.mxu1 %vm420_vm0, %v395_v37 }
  0x51   : > { %2478 = vmatmul.mubr.msk.bf16.gmra.mxu0 %vm420_vm0, %v380_v31 }
  0x54   : > { %2510 = vmatmul.mubr.msk.bf16.gmra.mxu1 %vm420_vm0, %v396_v40 }
  0xd9   : > { %v2451_v42 = vpop.f32.mrf.mxu0 }
  0xda   : > { %v560_v48 = vadd.f32 %v2451_v42, %v3079_v44 }
  0xdb   : > { %v551_v43 = vpop.f32.mrf.mxu0 }
  0xdc   : > { %v552_v46 = vadd.f32 %v3079_v44, %v551_v43  ;;  %v808_v57 = vmax.f32 %v560_v48, 0.0  ;;  %v3094_v61 = vpop.f32.mrf.mxu1 }
  0xdd   : > { %v2452_v45 = vpop.f32.mrf.mxu0 }
  0xde   : > { %v563_v47 = vadd.f32 %v2452_v45, %v3079_v44  ;;  %v806_v55 = vmax.f32 %v552_v46, 0.0  ;;  %v3098_v2 = vpop.f32.mrf.mxu1 }
  0xdf   : > { %v554_v49 = vpop.f32.mrf.mxu0 }
  0xe0   : > { %v555_v52 = vadd.f32 %v3079_v44, %v554_v49  ;;  %v809_v53 = vmax.f32 %v563_v47, 0.0  ;;  %v3105_v7 = vpop.f32.mrf.mxu1 }
  0xe1   : > { %v2455_v54 = vpop.f32.mrf.mxu0 }
  0xe2   : > { %v807_v56 = vmax.f32 %v555_v52, 0.0  ;;  %v871_v62 = vpack.c.bf16 %v809_v53, %v808_v57  ;;  %v576_v3 = vadd.f32 %v2455_v54, %v3079_v44  ;;  %v3107_v12 = vpop.f32.mrf.mxu1 }
  0xe3   : > { %v567_v58 = vpop.f32.mrf.mxu0 }
  0xe4   : > { %v870_v60 = vpack.c.bf16 %v807_v56, %v806_v55  ;;  %v568_v0 = vadd.f32 %v3079_v44, %v567_v58  ;;  %v812_v13 = vmax.f32 %v576_v3, 0.0  ;;  %v3112_v17 = vpop.f32.mrf.mxu1 }
  0xe5   : > { %v2456_v63 = vpop.f32.mrf.mxu0 }
  0xe6   : > { %v579_v1 = vadd.f32 %v2456_v63, %v3079_v44  ;;  %2529 = vmatprep.mubr.bf16.mxu1 %v870_v60  ;;  %v810_v10 = vmax.f32 %v568_v0, 0.0  ;;  %v3116_v22 = vpop.f32.mrf.mxu1 }
  0xe7   : > { %v570_v4 = vpop.f32.mrf.mxu0  ;;  %2530 = vmatmul.mubr.bf16.vlgmr.msra.gmra.mxu1 %v871_v62 }
  0xe8   : > { %v571_v6 = vadd.f32 %v3079_v44, %v570_v4  ;;  %v813_v8 = vmax.f32 %v579_v1, 0.0  ;;  %v3123_v27 = vpop.f32.mrf.mxu1 }
  0xe9   : > { %v2459_v9 = vpop.f32.mrf.mxu0 }
  0xea   : > { %v811_v11 = vmax.f32 %v571_v6, 0.0  ;;  %v873_v18 = vpack.c.bf16 %v813_v8, %v812_v13  ;;  %v592_v23 = vadd.f32 %v2459_v9, %v3079_v44  ;;  %v3125_v32 = vpop.f32.mrf.mxu1 }
  0xeb   : > { %v583_v14 = vpop.f32.mrf.mxu0 }
  0xec   : > { %v872_v16 = vpack.c.bf16 %v811_v11, %v810_v10  ;;  %v584_v20 = vadd.f32 %v3079_v44, %v583_v14  ;;  %v816_v33 = vmax.f32 %v592_v23, 0.0  ;;  %v3130_v37 = vpop.f32.mrf.mxu1 }
  0xed   : > { %v2460_v19 = vpop.f32.mrf.mxu0 }
  0xee   : > { %v595_v21 = vadd.f32 %v2460_v19, %v3079_v44  ;;  %2533 = vmatprep.mubr.bf16.mxu1 %v872_v16  ;;  %v814_v30 = vmax.f32 %v584_v20, 0.0  ;;  %v3134_v42 = vpop.f32.mrf.mxu1 }
  0xef   : > { %v586_v24 = vpop.f32.mrf.mxu0  ;;  %2534 = vmatmul.mubr.bf16.gmra.mxu1 %v873_v18 }
  0xf0   : > { %v587_v26 = vadd.f32 %v3079_v44, %v586_v24  ;;  %v817_v28 = vmax.f32 %v595_v21, 0.0  ;;  %v3138_v47 = vpop.f32.mrf.mxu1 }
  0xf1   : > { %v2463_v29 = vpop.f32.mrf.mxu0 }
  0xf2   : > { %v815_v31 = vmax.f32 %v587_v26, 0.0  ;;  %v875_v38 = vpack.c.bf16 %v817_v28, %v816_v33  ;;  %v608_v43 = vadd.f32 %v2463_v29, %v3079_v44  ;;  %v3140_v52 = vpop.f32.mrf.mxu1 }
  0xf3   : > { %v599_v34 = vpop.f32.mrf.mxu0 }
  0xf4   : > { %v874_v36 = vpack.c.bf16 %v815_v31, %v814_v30  ;;  %v600_v40 = vadd.f32 %v3079_v44, %v599_v34  ;;  %v820_v53 = vmax.f32 %v608_v43, 0.0  ;;  %v3142_v58 = vpop.f32.mrf.mxu1 }
  0xf5   : > { %v2464_v39 = vpop.f32.mrf.mxu0 }
  0xf6   : > { %v611_v41 = vadd.f32 %v2464_v39, %v3079_v44  ;;  %2537 = vmatprep.mubr.bf16.mxu1 %v874_v36  ;;  %v818_v50 = vmax.f32 %v600_v40, 0.0  ;;  %v3148_v4 = vpop.f32.mrf.mxu1 }
  0xf7   : > { %v602_v45 = vpop.f32.mrf.mxu0  ;;  %2538 = vmatmul.mubr.bf16.gmra.mxu1 %v875_v38 }
  0xf8   : > { %v603_v46 = vadd.f32 %v3079_v44, %v602_v45  ;;  %v821_v48 = vmax.f32 %v611_v41, 0.0  ;;  %v3150_v14 = vpop.f32.mrf.mxu1 }
  0xf9   : > { %v2467_v49 = vpop.f32.mrf.mxu0 }
  0xfa   : > { %v819_v51 = vmax.f32 %v603_v46, 0.0  ;;  %v877_v56 = vpack.c.bf16 %v821_v48, %v820_v53  ;;  %v624_v62 = vadd.f32 %v2467_v49, %v3079_v44  ;;  %v3156_v24 = vpop.f32.mrf.mxu1  ;;  %v680_v53 = vadd.f32 %v3079_v44, %v3098_v2 }
  0xfb   : > { %v615_v54 = vpop.f32.mrf.mxu0 }
  0xfc   : > { %v876_v55 = vpack.c.bf16 %v819_v51, %v818_v50  ;;  %v616_v59 = vadd.f32 %v3079_v44, %v615_v54  ;;  %v824_v8 = vmax.f32 %v624_v62, 0.0  ;;  %v3158_v34 = vpop.f32.mrf.mxu1  ;;  %v683_v54 = vadd.f32 %v3079_v44, %v3107_v12 }
  0xfd   : > { %v2468_v57 = vpop.f32.mrf.mxu0 }
  0xfe   : > { %v627_v60 = vadd.f32 %v2468_v57, %v3079_v44  ;;  %2541 = vmatprep.mubr.bf16.mxu1 %v876_v55  ;;  %v822_v5 = vmax.f32 %v616_v59, 0.0  ;;  %v3164_v45 = vpop.f32.mrf.mxu1  ;;  %v839_v2 = vmax.f32 %v683_v54, 0.0  ;;  %v739_v54 = vadd.f32 %v3150_v14, %v3079_v44 }
  0xff   : > { %v618_v63 = vpop.f32.mrf.mxu0  ;;  %2542 = vmatmul.mubr.bf16.gmra.mxu1 %v877_v56 }
 0x100   : > { %v619_v0 = vadd.f32 %v3079_v44, %v618_v63  ;;  %v825_v1 = vmax.f32 %v627_v60, 0.0  ;;  %v3170_v57 = vpop.f32.mrf.mxu1 }
 0x101   : > { %v2471_v3 = vpop.f32.mrf.mxu0  ;;  %v755_v14 = vadd.f32 %v3170_v57, %v3079_v44 }
 0x102   : > { %v823_v6 = vmax.f32 %v619_v0, 0.0  ;;  %v879_v11 = vpack.c.bf16 %v825_v1, %v824_v8  ;;  %v640_v18 = vadd.f32 %v2471_v3, %v3079_v44  ;;  %v838_v0 = vmax.f32 %v680_v53, 0.0 }
 0x103   : > { %v631_v9 = vpop.f32.mrf.mxu0  ;;  %v736_v53 = vadd.f32 %v3142_v58, %v3079_v44  ;;  %v752_v58 = vadd.f32 %v3158_v34, %v3079_v44 }
 0x104   : > { %v878_v10 = vpack.c.bf16 %v823_v6, %v822_v5  ;;  %v632_v15 = vadd.f32 %v3079_v44, %v631_v9  ;;  %v828_v28 = vmax.f32 %v640_v18, 0.0  ;;  %v746_v5 = vpop.f32.mrf.mxu1  ;;  %v691_v18 = vadd.f32 %v3105_v7, %v3079_v44 }
 0x105   : > { %v2472_v13 = vpop.f32.mrf.mxu0  ;;  %v704_v7 = vadd.f32 %v3112_v17, %v3079_v44  ;;  %v720_v17 = vadd.f32 %v3130_v37, %v3079_v44  ;;  %v744_v37 = vadd.f32 %v3079_v44, %v3164_v45 }
 0x106   : > { %v643_v16 = vadd.f32 %v2472_v13, %v3079_v44  ;;  %2545 = vmatprep.mubr.bf16.mxu1 %v878_v10  ;;  %v826_v25 = vmax.f32 %v632_v15, 0.0  ;;  %v886_v10 = vpack.c.bf16 %v839_v2, %v838_v0  ;;  %v699_v13 = vadd.f32 %v3079_v44, %v3125_v32 }
 0x107   : > { %v634_v19 = vpop.f32.mrf.mxu0  ;;  %2546 = vmatmul.mubr.bf16.gmra.mxu1 %v879_v11  ;;  %v696_v11 = vadd.f32 %v3079_v44, %v3116_v22  ;;  %v688_v15 = vadd.f32 %v3094_v61, %v3079_v44  ;;  %v712_v32 = vadd.f32 %v3079_v44, %v3134_v42  ;;  %v715_v61 = vadd.f32 %v3079_v44, %v3140_v52 }
 0x108   : > { %v635_v20 = vadd.f32 %v3079_v44, %v634_v19  ;;  %v829_v21 = vmax.f32 %v643_v16, 0.0  ;;  %v3184_v19 = vpop.f32.mrf.mxu1  ;;  %v728_v42 = vadd.f32 %v3079_v44, %v3148_v4  ;;  %v731_v52 = vadd.f32 %v3079_v44, %v3156_v24 }
 0x109   : > { %v2475_v23 = vpop.f32.mrf.mxu0  ;;  %v848_v4 = vmax.f32 %v720_v17, 0.0  ;;  %v768_v34 = vadd.f32 %v3184_v19, %v3079_v44 }
 0x10a   : > { %v827_v26 = vmax.f32 %v635_v20, 0.0  ;;  %v881_v31 = vpack.c.bf16 %v829_v21, %v828_v28  ;;  %v656_v38 = vadd.f32 %v2475_v23, %v3079_v44  ;;  %v842_v20 = vmax.f32 %v696_v11, 0.0  ;;  %v759_v22 = vpop.f32.mrf.mxu1 }
 0x10b   : > { %v647_v29 = vpop.f32.mrf.mxu0  ;;  %v843_v21 = vmax.f32 %v699_v13, 0.0  ;;  %v840_v23 = vmax.f32 %v688_v15, 0.0  ;;  %v760_v45 = vadd.f32 %v3079_v44, %v759_v22 }
 0x10c   : > { %v880_v30 = vpack.c.bf16 %v827_v26, %v826_v25  ;;  %v648_v35 = vadd.f32 %v3079_v44, %v647_v29  ;;  %v832_v49 = vmax.f32 %v656_v38, 0.0  ;;  %v841_v25 = vmax.f32 %v691_v18, 0.0 }
 0x10d   : > { %v2476_v33 = vpop.f32.mrf.mxu0  ;;  %v888_v26 = vpack.c.bf16 %v843_v21, %v842_v20  ;;  %v707_v29 = vadd.f32 %v3123_v27, %v3079_v44  ;;  %v723_v27 = vadd.f32 %v3138_v47, %v3079_v44  ;;  %v747_v47 = vadd.f32 %v3079_v44, %v746_v5 }
 0x10e   : > { %v659_v36 = vadd.f32 %v2476_v33, %v3079_v44  ;;  %2549 = vmatprep.mubr.bf16.mxu1 %v880_v30  ;;  %v830_v46 = vmax.f32 %v648_v35, 0.0  ;;  %v887_v28 = vpack.c.bf16 %v841_v25, %v840_v23  ;;  %v2504_v30 = vpop.f32.mrf.mxu1  ;;  %v847_v33 = vmax.f32 %v715_v61, 0.0 }
 0x10f   : > { %v650_v39 = vpop.f32.mrf.mxu0  ;;  %2550 = vmatmul.mubr.bf16.gmra.mxu1 %v881_v31  ;;  %v846_v31 = vmax.f32 %v712_v32, 0.0  ;;  %v844_v35 = vmax.f32 %v704_v7, 0.0  ;;  %v858_v5 = vmax.f32 %v760_v45, 0.0  ;;  %v860_v21 = vmax.f32 %v768_v34, 0.0 }
 0x110   : > { %v651_v40 = vadd.f32 %v3079_v44, %v650_v39  ;;  %v833_v41 = vmax.f32 %v659_v36, 0.0  ;;  %v845_v36 = vmax.f32 %v707_v29, 0.0  ;;  %v762_v38 = vpop.f32.mrf.mxu1 }
 0x111   : > { %v2479_v43 = vpop.f32.mrf.mxu0  ;;  %v890_v39 = vpack.c.bf16 %v847_v33, %v846_v31 }
 0x112   : > { %v831_v48 = vmax.f32 %v651_v40, 0.0  ;;  %v883_v55 = vpack.c.bf16 %v833_v41, %v832_v49  ;;  %v672_v62 = vadd.f32 %v2479_v43, %v3079_v44  ;;  %v889_v40 = vpack.c.bf16 %v845_v36, %v844_v35  ;;  %v2507_v41 = vpop.f32.mrf.mxu1  ;;  %v2782_v43 = vld [vmem:[%s3709_s5] sm:$0xff]  }
 0x113   : > { %v663_v50 = vpop.f32.mrf.mxu0  ;;  %v849_v49 = vmax.f32 %v723_v27, 0.0  ;;  %2607 = vmatprep.subr.bf16.mxu0 %v2782_v43  ;;  %v3232_v27 = vld [vmem:[%s3708_s4] ss:$0 sm:$0xff] }
 0x114   : > { %v882_v51 = vpack.c.bf16 %v831_v48, %v830_v46  ;;  %v664_v59 = vadd.f32 %v3079_v44, %v663_v50  ;;  %v836_v8 = vmax.f32 %v672_v62, 0.0  ;;  %v850_v46 = vmax.f32 %v728_v42, 0.0  ;;  %v775_v50 = vpop.f32.mrf.mxu1  ;;  %2608 = vmatpush3.bf16.msra.mxu0 %v2782_v43 }
 0x115   : > { %v2480_v56 = vpop.f32.mrf.mxu0  ;;  %v851_v48 = vmax.f32 %v731_v52, 0.0  ;;  %v853_v62 = vmax.f32 %v739_v54, 0.0  ;;  %v776_v11 = vadd.f32 %v3079_v44, %v775_v50 }
 0x116   : > { %v675_v60 = vadd.f32 %v2480_v56, %v3079_v44  ;;  %2553 = vmatprep.mubr.bf16.mxu1 %v882_v51  ;;  %v834_v12 = vmax.f32 %v664_v59, 0.0  ;;  %v891_v51 = vpack.c.bf16 %v849_v49, %v848_v4  ;;  %v854_v56 = vmax.f32 %v744_v37, 0.0 }
 0x117   : > { %v666_v63 = vpop.f32.mrf.mxu0  ;;  %2554 = vmatmul.mubr.bf16.gmra.mxu1 %v883_v55  ;;  %v892_v24 = vpack.c.bf16 %v851_v48, %v850_v46  ;;  %v2508_v55 = vpop.f32.mrf.mxu1  ;;  %v855_v59 = vmax.f32 %v747_v47, 0.0  ;;  %v862_v18 = vmax.f32 %v776_v11, 0.0 }
 0x118   : > { %v667_v1 = vadd.f32 %v3079_v44, %v666_v63  ;;  %v837_v3 = vmax.f32 %v675_v60, 0.0  ;;  %v852_v60 = vmax.f32 %v736_v53, 0.0  ;;  %v787_v19 = vadd.f32 %v2508_v55, %v3079_v44 }
 0x119   : > { %v778_v63 = vpop.f32.mrf.mxu1  ;;  %v894_v0 = vpack.c.bf16 %v855_v59, %v854_v56 }
 0x11a   : > { %v835_v6 = vmax.f32 %v667_v1, 0.0  ;;  %v885_v16 = vpack.c.bf16 %v837_v3, %v836_v8  ;;  %v763_v1 = vadd.f32 %v3079_v44, %v762_v38  ;;  %v893_v2 = vpack.c.bf16 %v853_v62, %v852_v60 }
 0x11b   : > { %v2511_v3 = vpop.f32.mrf.mxu1  ;;  %v857_v8 = vmax.f32 %v755_v14, 0.0  ;;  %v779_v13 = vadd.f32 %v3079_v44, %v778_v63  ;;  %v865_v31 = vmax.f32 %v787_v19, 0.0 }
 0x11c   : > { %v884_v9 = vpack.c.bf16 %v835_v6, %v834_v12  ;;  %v859_v12 = vmax.f32 %v763_v1, 0.0  ;;  %v856_v6 = vmax.f32 %v752_v58, 0.0  ;;  %v800_v36 = vadd.f32 %v2511_v3, %v3079_v44 }
 0x11d   : > { %v863_v20 = vmax.f32 %v779_v13, 0.0 }
 0x11e   : > { %2557 = vmatprep.mubr.bf16.mxu1 %v884_v9  ;;  %v791_v9 = vpop.f32.mrf.mxu1  ;;  %v895_v15 = vpack.c.bf16 %v857_v8, %v856_v6 }
 0x11f   : > { %2558 = vmatmul.mubr.bf16.gmra.mxu1 %v885_v16  ;;  %v771_v16 = vadd.f32 %v2504_v30, %v3079_v44  ;;  %v898_v22 = vpack.c.bf16 %v863_v20, %v862_v18 }
 0x120   : > { %2561 = vmatprep.mubr.bf16.mxu1 %v886_v10  ;;  %v896_v10 = vpack.c.bf16 %v859_v12, %v858_v5  ;;  %v2512_v57 = vpop.f32.mrf.mxu1 }
 0x121   : > { %v861_v23 = vmax.f32 %v771_v16, 0.0  ;;  %v803_v38 = vadd.f32 %v2512_v57, %v3079_v44 }
 0x122   : > { %v794_v25 = vpop.f32.mrf.mxu1 }
 0x123   : > { %v795_v32 = vadd.f32 %v3079_v44, %v794_v25  ;;  %v897_v61 = vpack.c.bf16 %v861_v23, %v860_v21  ;;  %v869_v42 = vmax.f32 %v803_v38, 0.0 }
 0x125   : > { %v867_v29 = vmax.f32 %v795_v32, 0.0 }
 0x127   : > { %2562 = vmatmul.mubr.bf16.gmra.mxu1 %v887_v28  ;;  %v784_v28 = vadd.f32 %v2507_v41, %v3079_v44 }
 0x128   : > { %2565 = vmatprep.mubr.bf16.mxu1 %v888_v26  ;;  %v792_v26 = vadd.f32 %v3079_v44, %v791_v9 }
 0x129   : > { %v864_v30 = vmax.f32 %v784_v28, 0.0 }
 0x12a   : > { %v866_v7 = vmax.f32 %v792_v26, 0.0 }
 0x12b   : > { %v899_v35 = vpack.c.bf16 %v865_v31, %v864_v30 }
 0x12c   : > { %v900_v33 = vpack.c.bf16 %v867_v29, %v866_v7 }
 0x12f   : > { %2566 = vmatmul.mubr.bf16.gmra.mxu1 %v889_v40 }
 0x130   : > { %2569 = vmatprep.mubr.bf16.mxu1 %v890_v39  ;;  %v868_v39 = vmax.f32 %v800_v36, 0.0 }
 0x132   : > { %v901_v52 = vpack.c.bf16 %v869_v42, %v868_v39 }
 0x137   : > { %2570 = vmatmul.mubr.bf16.gmra.mxu1 %v891_v51 }
 0x138   : > { %2573 = vmatprep.mubr.bf16.mxu1 %v892_v24 }
 0x13f   : > { %2574 = vmatmul.mubr.bf16.gmra.mxu1 %v893_v2 }
 0x140   : > { %2577 = vmatprep.mubr.bf16.mxu1 %v894_v0 }
 0x147   : > { %2578 = vmatmul.mubr.bf16.gmra.mxu1 %v895_v15 }
 0x148   : > { %2581 = vmatprep.mubr.bf16.mxu1 %v896_v10 }
 0x14f   : > { %2582 = vmatmul.mubr.bf16.gmra.mxu1 %v897_v61 }
 0x150   : > { %2585 = vmatprep.mubr.bf16.mxu1 %v898_v22 }
 0x157   : > { %2586 = vmatmul.mubr.bf16.gmra.mxu1 %v899_v35 }
 0x158   : > { %2589 = vmatprep.mubr.bf16.mxu1 %v900_v33 }
 0x15f   : > { %2590 = vmatmul.mubr.bf16.gmra.mxu1 %v901_v52 }
 0x1a7   : > { %v2531_v40 = vpop.f32.mrf.mxu1 }
 0x1a8   : > { %v1016_v44 = vadd.f32 %v2531_v40, %v3232_v27 }
 0x1a9   : > { %v1007_v17 = vpop.f32.mrf.mxu1 }
 0x1aa   : > { %v1008_v43 = vadd.f32 %v3232_v27, %v1007_v17  ;;  %v1264_v47 = vmax.f32 %v1016_v44, 0.0 }
 0x1ab   : > { %v2532_v41 = vpop.f32.mrf.mxu1 }
 0x1ac   : > { %v1019_v46 = vadd.f32 %v2532_v41, %v3232_v27  ;;  %v1262_v24 = vmax.f32 %v1008_v43, 0.0 }
 0x1ad   : > { %v1010_v48 = vpop.f32.mrf.mxu1 }
 0x1ae   : > { %v1011_v4 = vadd.f32 %v3232_v27, %v1010_v48  ;;  %v1265_v49 = vmax.f32 %v1019_v46, 0.0 }
 0x1af   : > { %v2535_v50 = vpop.f32.mrf.mxu1 }
 0x1b0   : > { %v1263_v37 = vmax.f32 %v1011_v4, 0.0  ;;  %v1327_v54 = vpack.c.bf16 %v1265_v49, %v1264_v47  ;;  %v1032_v60 = vadd.f32 %v2535_v50, %v3232_v27 }
 0x1b1   : > { %v1023_v51 = vpop.f32.mrf.mxu1 }
 0x1b2   : > { %v1326_v53 = vpack.c.bf16 %v1263_v37, %v1262_v24  ;;  %v1024_v56 = vadd.f32 %v3232_v27, %v1023_v51  ;;  %v1268_v58 = vmax.f32 %v1032_v60, 0.0 }
 0x1b3   : > { %v2536_v55 = vpop.f32.mrf.mxu1 }
 0x1b4   : > { %v1035_v59 = vadd.f32 %v2536_v55, %v3232_v27  ;;  %2609 = vmatprep.mubr.bf16.mxu0 %v1326_v53  ;;  %v1266_v1 = vmax.f32 %v1024_v56, 0.0 }
 0x1b5   : > { %v1026_v62 = vpop.f32.mrf.mxu1  ;;  %2610 = vmatmul.mubr.bf16.vlgmr.msra.gmra.mxu0 %v1327_v54 }
 0x1b6   : > { %v1027_v63 = vadd.f32 %v3232_v27, %v1026_v62  ;;  %v1269_v0 = vmax.f32 %v1035_v59, 0.0 }
 0x1b7   : > { %v2539_v45 = vpop.f32.mrf.mxu1 }
 0x1b8   : > { %v1267_v2 = vmax.f32 %v1027_v63, 0.0  ;;  %v1329_v5 = vpack.c.bf16 %v1269_v0, %v1268_v58  ;;  %v1048_v9 = vadd.f32 %v2539_v45, %v3232_v27 }
 0x1b9   : > { %v1039_v14 = vpop.f32.mrf.mxu1 }
 0x1ba   : > { %v1328_v3 = vpack.c.bf16 %v1267_v2, %v1266_v1  ;;  %v1040_v6 = vadd.f32 %v3232_v27, %v1039_v14  ;;  %v1272_v57 = vmax.f32 %v1048_v9, 0.0 }
 0x1bb   : > { %v2540_v12 = vpop.f32.mrf.mxu1 }
 0x1bc   : > { %v1051_v8 = vadd.f32 %v2540_v12, %v3232_v27  ;;  %2613 = vmatprep.mubr.bf16.mxu0 %v1328_v3  ;;  %v1270_v34 = vmax.f32 %v1040_v6, 0.0 }
 0x1bd   : > { %v1042_v10 = vpop.f32.mrf.mxu1  ;;  %2614 = vmatmul.mubr.bf16.gmra.mxu0 %v1329_v5 }
 0x1be   : > { %v1043_v11 = vadd.f32 %v3232_v27, %v1042_v10  ;;  %v1273_v13 = vmax.f32 %v1051_v8, 0.0 }
 0x1bf   : > { %v2543_v15 = vpop.f32.mrf.mxu1 }
 0x1c0   : > { %v1271_v16 = vmax.f32 %v1043_v11, 0.0  ;;  %v1331_v21 = vpack.c.bf16 %v1273_v13, %v1272_v57  ;;  %v1064_v26 = vadd.f32 %v2543_v15, %v3232_v27 }
 0x1c1   : > { %v1055_v18 = vpop.f32.mrf.mxu1 }
 0x1c2   : > { %v1330_v20 = vpack.c.bf16 %v1271_v16, %v1270_v34  ;;  %v1056_v25 = vadd.f32 %v3232_v27, %v1055_v18  ;;  %v1276_v30 = vmax.f32 %v1064_v26, 0.0 }
 0x1c3   : > { %v2544_v23 = vpop.f32.mrf.mxu1 }
 0x1c4   : > { %v1067_v22 = vadd.f32 %v2544_v23, %v3232_v27  ;;  %2617 = vmatprep.mubr.bf16.mxu0 %v1330_v20  ;;  %v1274_v7 = vmax.f32 %v1056_v25, 0.0 }
 0x1c5   : > { %v1058_v32 = vpop.f32.mrf.mxu1  ;;  %2618 = vmatmul.mubr.bf16.gmra.mxu0 %v1331_v21 }
 0x1c6   : > { %v1059_v61 = vadd.f32 %v3232_v27, %v1058_v32  ;;  %v1277_v28 = vmax.f32 %v1067_v22, 0.0 }
 0x1c7   : > { %v2547_v19 = vpop.f32.mrf.mxu1 }
 0x1c8   : > { %v1275_v29 = vmax.f32 %v1059_v61, 0.0  ;;  %v1333_v35 = vpack.c.bf16 %v1277_v28, %v1276_v30  ;;  %v1080_v42 = vadd.f32 %v2547_v19, %v3232_v27 }
 0x1c9   : > { %v1071_v31 = vpop.f32.mrf.mxu1 }
 0x1ca   : > { %v1332_v33 = vpack.c.bf16 %v1275_v29, %v1274_v7  ;;  %v1072_v38 = vadd.f32 %v3232_v27, %v1071_v31  ;;  %v1280_v44 = vmax.f32 %v1080_v42, 0.0 }
 0x1cb   : > { %v2548_v36 = vpop.f32.mrf.mxu1 }
 0x1cc   : > { %v1083_v39 = vadd.f32 %v2548_v36, %v3232_v27  ;;  %2621 = vmatprep.mubr.bf16.mxu0 %v1332_v33  ;;  %v1278_v43 = vmax.f32 %v1072_v38, 0.0 }
 0x1cd   : > { %v1074_v52 = vpop.f32.mrf.mxu1  ;;  %2622 = vmatmul.mubr.bf16.gmra.mxu0 %v1333_v35 }
 0x1ce   : > { %v1075_v40 = vadd.f32 %v3232_v27, %v1074_v52  ;;  %v1281_v17 = vmax.f32 %v1083_v39, 0.0 }
 0x1cf   : > { %v2551_v41 = vpop.f32.mrf.mxu1 }
 0x1d0   : > { %v1279_v46 = vmax.f32 %v1075_v40, 0.0  ;;  %v1335_v49 = vpack.c.bf16 %v1281_v17, %v1280_v44  ;;  %v1096_v47 = vadd.f32 %v2551_v41, %v3232_v27 }
 0x1d1   : > { %v1087_v48 = vpop.f32.mrf.mxu1 }
 0x1d2   : > { %v1334_v4 = vpack.c.bf16 %v1279_v46, %v1278_v43  ;;  %v1088_v24 = vadd.f32 %v3232_v27, %v1087_v48  ;;  %v1284_v60 = vmax.f32 %v1096_v47, 0.0 }
 0x1d3   : > { %v2552_v50 = vpop.f32.mrf.mxu1 }
 0x1d4   : > { %v1099_v37 = vadd.f32 %v2552_v50, %v3232_v27  ;;  %2625 = vmatprep.mubr.bf16.mxu0 %v1334_v4  ;;  %v1282_v56 = vmax.f32 %v1088_v24, 0.0 }
 0x1d5   : > { %v1090_v51 = vpop.f32.mrf.mxu1  ;;  %2626 = vmatmul.mubr.bf16.gmra.mxu0 %v1335_v49 }
 0x1d6   : > { %v1091_v53 = vadd.f32 %v3232_v27, %v1090_v51  ;;  %v1285_v54 = vmax.f32 %v1099_v37, 0.0 }
 0x1d7   : > { %v2555_v55 = vpop.f32.mrf.mxu1 }
 0x1d8   : > { %v1283_v59 = vmax.f32 %v1091_v53, 0.0  ;;  %v1337_v0 = vpack.c.bf16 %v1285_v54, %v1284_v60  ;;  %v1112_v58 = vadd.f32 %v2555_v55, %v3232_v27 }
 0x1d9   : > { %v1103_v62 = vpop.f32.mrf.mxu1 }
 0x1da   : > { %v1336_v63 = vpack.c.bf16 %v1283_v59, %v1282_v56  ;;  %v1104_v1 = vadd.f32 %v3232_v27, %v1103_v62  ;;  %v1288_v9 = vmax.f32 %v1112_v58, 0.0 }
 0x1db   : > { %v2556_v45 = vpop.f32.mrf.mxu1 }
 0x1dc   : > { %v1115_v2 = vadd.f32 %v2556_v45, %v3232_v27  ;;  %2629 = vmatprep.mubr.bf16.mxu0 %v1336_v63  ;;  %v1286_v6 = vmax.f32 %v1104_v1, 0.0 }
 0x1dd   : > { %v1106_v14 = vpop.f32.mrf.mxu1  ;;  %2630 = vmatmul.mubr.bf16.gmra.mxu0 %v1337_v0 }
 0x1de   : > { %v1107_v3 = vadd.f32 %v3232_v27, %v1106_v14  ;;  %v1289_v5 = vmax.f32 %v1115_v2, 0.0 }
 0x1df   : > { %v2559_v12 = vpop.f32.mrf.mxu1 }
 0x1e0   : > { %v1287_v8 = vmax.f32 %v1107_v3, 0.0  ;;  %v1339_v13 = vpack.c.bf16 %v1289_v5, %v1288_v9  ;;  %v1128_v57 = vadd.f32 %v2559_v12, %v3232_v27 }
 0x1e1   : > { %v1119_v10 = vpop.f32.mrf.mxu1 }
 0x1e2   : > { %v1338_v11 = vpack.c.bf16 %v1287_v8, %v1286_v6  ;;  %v1120_v34 = vadd.f32 %v3232_v27, %v1119_v10  ;;  %v1292_v26 = vmax.f32 %v1128_v57, 0.0 }
 0x1e3   : > { %v2560_v15 = vpop.f32.mrf.mxu1 }
 0x1e4   : > { %v1131_v16 = vadd.f32 %v2560_v15, %v3232_v27  ;;  %2633 = vmatprep.mubr.bf16.mxu0 %v1338_v11  ;;  %v1290_v25 = vmax.f32 %v1120_v34, 0.0 }
 0x1e5   : > { %v1122_v18 = vpop.f32.mrf.mxu1  ;;  %2634 = vmatmul.mubr.bf16.gmra.mxu0 %v1339_v13 }
 0x1e6   : > { %v1123_v20 = vadd.f32 %v3232_v27, %v1122_v18  ;;  %v1293_v21 = vmax.f32 %v1131_v16, 0.0 }
 0x1e7   : > { %v2563_v23 = vpop.f32.mrf.mxu1 }
 0x1e8   : > { %v1291_v22 = vmax.f32 %v1123_v20, 0.0  ;;  %v1341_v28 = vpack.c.bf16 %v1293_v21, %v1292_v26  ;;  %v1144_v30 = vadd.f32 %v2563_v23, %v3232_v27 }
 0x1e9   : > { %v1135_v32 = vpop.f32.mrf.mxu1 }
 0x1ea   : > { %v1340_v61 = vpack.c.bf16 %v1291_v22, %v1290_v25  ;;  %v1136_v7 = vadd.f32 %v3232_v27, %v1135_v32  ;;  %v1296_v42 = vmax.f32 %v1144_v30, 0.0 }
 0x1eb   : > { %v2564_v19 = vpop.f32.mrf.mxu1 }
 0x1ec   : > { %v1147_v29 = vadd.f32 %v2564_v19, %v3232_v27  ;;  %2637 = vmatprep.mubr.bf16.mxu0 %v1340_v61  ;;  %v1294_v38 = vmax.f32 %v1136_v7, 0.0 }
 0x1ed   : > { %v1138_v31 = vpop.f32.mrf.mxu1  ;;  %2638 = vmatmul.mubr.bf16.gmra.mxu0 %v1341_v28 }
 0x1ee   : > { %v1139_v33 = vadd.f32 %v3232_v27, %v1138_v31  ;;  %v1297_v35 = vmax.f32 %v1147_v29, 0.0 }
 0x1ef   : > { %v2567_v36 = vpop.f32.mrf.mxu1 }
 0x1f0   : > { %v1295_v39 = vmax.f32 %v1139_v33, 0.0  ;;  %v1343_v17 = vpack.c.bf16 %v1297_v35, %v1296_v42  ;;  %v1160_v44 = vadd.f32 %v2567_v36, %v3232_v27 }
 0x1f1   : > { %v1151_v52 = vpop.f32.mrf.mxu1 }
 0x1f2   : > { %v1342_v40 = vpack.c.bf16 %v1295_v39, %v1294_v38  ;;  %v1152_v43 = vadd.f32 %v3232_v27, %v1151_v52  ;;  %v1300_v47 = vmax.f32 %v1160_v44, 0.0 }
 0x1f3   : > { %v2568_v41 = vpop.f32.mrf.mxu1 }
 0x1f4   : > { %v1163_v46 = vadd.f32 %v2568_v41, %v3232_v27  ;;  %2641 = vmatprep.mubr.bf16.mxu0 %v1342_v40  ;;  %v1298_v24 = vmax.f32 %v1152_v43, 0.0 }
 0x1f5   : > { %v1154_v48 = vpop.f32.mrf.mxu1  ;;  %2642 = vmatmul.mubr.bf16.gmra.mxu0 %v1343_v17 }
 0x1f6   : > { %v1155_v4 = vadd.f32 %v3232_v27, %v1154_v48  ;;  %v1301_v49 = vmax.f32 %v1163_v46, 0.0 }
 0x1f7   : > { %v2571_v50 = vpop.f32.mrf.mxu1 }
 0x1f8   : > { %v1299_v37 = vmax.f32 %v1155_v4, 0.0  ;;  %v1345_v54 = vpack.c.bf16 %v1301_v49, %v1300_v47  ;;  %v1176_v60 = vadd.f32 %v2571_v50, %v3232_v27 }
 0x1f9   : > { %v1167_v51 = vpop.f32.mrf.mxu1 }
 0x1fa   : > { %v1344_v53 = vpack.c.bf16 %v1299_v37, %v1298_v24  ;;  %v1168_v56 = vadd.f32 %v3232_v27, %v1167_v51  ;;  %v1304_v58 = vmax.f32 %v1176_v60, 0.0 }
 0x1fb   : > { %v2572_v55 = vpop.f32.mrf.mxu1 }
 0x1fc   : > { %v1179_v59 = vadd.f32 %v2572_v55, %v3232_v27  ;;  %2645 = vmatprep.mubr.bf16.mxu0 %v1344_v53  ;;  %v1302_v1 = vmax.f32 %v1168_v56, 0.0 }
 0x1fd   : > { %v1170_v62 = vpop.f32.mrf.mxu1  ;;  %2646 = vmatmul.mubr.bf16.gmra.mxu0 %v1345_v54 }
 0x1fe   : > { %v1171_v63 = vadd.f32 %v3232_v27, %v1170_v62  ;;  %v1305_v0 = vmax.f32 %v1179_v59, 0.0 }
 0x1ff   : > { %v2575_v45 = vpop.f32.mrf.mxu1 }
 0x200   : > { %v1303_v2 = vmax.f32 %v1171_v63, 0.0  ;;  %v1347_v5 = vpack.c.bf16 %v1305_v0, %v1304_v58  ;;  %v1192_v9 = vadd.f32 %v2575_v45, %v3232_v27 }
 0x201   : > { %v1183_v14 = vpop.f32.mrf.mxu1 }
 0x202   : > { %v1346_v3 = vpack.c.bf16 %v1303_v2, %v1302_v1  ;;  %v1184_v6 = vadd.f32 %v3232_v27, %v1183_v14  ;;  %v1308_v57 = vmax.f32 %v1192_v9, 0.0 }
 0x203   : > { %v2576_v12 = vpop.f32.mrf.mxu1 }
 0x204   : > { %v1195_v8 = vadd.f32 %v2576_v12, %v3232_v27  ;;  %2649 = vmatprep.mubr.bf16.mxu0 %v1346_v3  ;;  %v1306_v34 = vmax.f32 %v1184_v6, 0.0 }
 0x205   : > { %v1186_v10 = vpop.f32.mrf.mxu1  ;;  %2650 = vmatmul.mubr.bf16.gmra.mxu0 %v1347_v5 }
 0x206   : > { %v1187_v11 = vadd.f32 %v3232_v27, %v1186_v10  ;;  %v1309_v13 = vmax.f32 %v1195_v8, 0.0 }
 0x207   : > { %v2579_v15 = vpop.f32.mrf.mxu1 }
 0x208   : > { %v1307_v16 = vmax.f32 %v1187_v11, 0.0  ;;  %v1349_v21 = vpack.c.bf16 %v1309_v13, %v1308_v57  ;;  %v1208_v26 = vadd.f32 %v2579_v15, %v3232_v27  ;;  %v3302_v11 = vld [vmem:[%s3710_s6] ss:$0 sm:$0xff] }
 0x209   : > { %v1199_v18 = vpop.f32.mrf.mxu1 }
 0x20a   : > { %v1348_v20 = vpack.c.bf16 %v1307_v16, %v1306_v34  ;;  %v1200_v25 = vadd.f32 %v3232_v27, %v1199_v18  ;;  %v1312_v30 = vmax.f32 %v1208_v26, 0.0 }
 0x20b   : > { %v2580_v23 = vpop.f32.mrf.mxu1 }
 0x20c   : > { %v1211_v22 = vadd.f32 %v2580_v23, %v3232_v27  ;;  %2653 = vmatprep.mubr.bf16.mxu0 %v1348_v20  ;;  %v1310_v7 = vmax.f32 %v1200_v25, 0.0 }
 0x20d   : > { %v1202_v32 = vpop.f32.mrf.mxu1  ;;  %2654 = vmatmul.mubr.bf16.gmra.mxu0 %v1349_v21 }
 0x20e   : > { %v1203_v61 = vadd.f32 %v3232_v27, %v1202_v32  ;;  %v1313_v28 = vmax.f32 %v1211_v22, 0.0 }
 0x20f   : > { %v2583_v19 = vpop.f32.mrf.mxu1 }
 0x210   : > { %v1311_v29 = vmax.f32 %v1203_v61, 0.0  ;;  %v1351_v35 = vpack.c.bf16 %v1313_v28, %v1312_v30  ;;  %v1224_v42 = vadd.f32 %v2583_v19, %v3232_v27 }
 0x211   : > { %v1215_v31 = vpop.f32.mrf.mxu1 }
 0x212   : > { %v1350_v33 = vpack.c.bf16 %v1311_v29, %v1310_v7  ;;  %v1216_v38 = vadd.f32 %v3232_v27, %v1215_v31  ;;  %v1316_v44 = vmax.f32 %v1224_v42, 0.0 }
 0x213   : > { %v2584_v36 = vpop.f32.mrf.mxu1 }
 0x214   : > { %v1227_v39 = vadd.f32 %v2584_v36, %v3232_v27  ;;  %2657 = vmatprep.mubr.bf16.mxu0 %v1350_v33  ;;  %v1314_v43 = vmax.f32 %v1216_v38, 0.0 }
 0x215   : > { %v1218_v52 = vpop.f32.mrf.mxu1  ;;  %2658 = vmatmul.mubr.bf16.gmra.mxu0 %v1351_v35 }
 0x216   : > { %v1219_v40 = vadd.f32 %v3232_v27, %v1218_v52  ;;  %v1317_v17 = vmax.f32 %v1227_v39, 0.0 }
 0x217   : > { %v2587_v41 = vpop.f32.mrf.mxu1 }
 0x218   : > { %v1315_v46 = vmax.f32 %v1219_v40, 0.0  ;;  %v1353_v49 = vpack.c.bf16 %v1317_v17, %v1316_v44  ;;  %v1240_v47 = vadd.f32 %v2587_v41, %v3232_v27 }
 0x219   : > { %v1231_v48 = vpop.f32.mrf.mxu1 }
 0x21a   : > { %v1352_v4 = vpack.c.bf16 %v1315_v46, %v1314_v43  ;;  %v1232_v24 = vadd.f32 %v3232_v27, %v1231_v48  ;;  %v1320_v60 = vmax.f32 %v1240_v47, 0.0 }
 0x21b   : > { %v2588_v50 = vpop.f32.mrf.mxu1 }
 0x21c   : > { %v1243_v37 = vadd.f32 %v2588_v50, %v3232_v27  ;;  %2661 = vmatprep.mubr.bf16.mxu0 %v1352_v4  ;;  %v1318_v56 = vmax.f32 %v1232_v24, 0.0 }
 0x21d   : > { %v1234_v51 = vpop.f32.mrf.mxu1  ;;  %2662 = vmatmul.mubr.bf16.gmra.mxu0 %v1353_v49 }
 0x21e   : > { %v1235_v53 = vadd.f32 %v3232_v27, %v1234_v51  ;;  %v1321_v54 = vmax.f32 %v1243_v37, 0.0 }
 0x21f   : > { %v2591_v55 = vpop.f32.mrf.mxu1 }
 0x220   : > { %v1319_v59 = vmax.f32 %v1235_v53, 0.0  ;;  %v1355_v0 = vpack.c.bf16 %v1321_v54, %v1320_v60  ;;  %v1256_v58 = vadd.f32 %v2591_v55, %v3232_v27 }
 0x221   : > { %v1247_v62 = vpop.f32.mrf.mxu1 }
 0x222   : > { %v1354_v63 = vpack.c.bf16 %v1319_v59, %v1318_v56  ;;  %v1248_v1 = vadd.f32 %v3232_v27, %v1247_v62  ;;  %v1324_v8 = vmax.f32 %v1256_v58, 0.0 }
 0x223   : > { %v2592_v45 = vpop.f32.mrf.mxu1 }
 0x224   : > { %v1259_v2 = vadd.f32 %v2592_v45, %v3232_v27  ;;  %2665 = vmatprep.mubr.bf16.mxu0 %v1354_v63  ;;  %v1322_v12 = vmax.f32 %v1248_v1, 0.0 }
 0x225   : > { %v1250_v14 = vpop.f32.mrf.mxu1  ;;  %2666 = vmatmul.mubr.bf16.gmra.mxu0 %v1355_v0 }
 0x226   : > { %v1251_v3 = vadd.f32 %v3232_v27, %v1250_v14  ;;  %v1325_v5 = vmax.f32 %v1259_v2, 0.0 }
 0x228   : > { %v1323_v6 = vmax.f32 %v1251_v3, 0.0  ;;  %v1357_v10 = vpack.c.bf16 %v1325_v5, %v1324_v8 }
 0x22a   : > { %v1356_v9 = vpack.c.bf16 %v1323_v6, %v1322_v12 }
 0x22c   : > { %2669 = vmatprep.mubr.bf16.mxu0 %v1356_v9 }
 0x22d   : > { %2670 = vmatmul.mubr.bf16.gmra.mxu0 %v1357_v10 }
 0x275   : > { %v2611_v13 = vpop.f32.mrf.mxu0 }
 0x276   : > { %v1472_v15 = vadd.f32 %v2611_v13, %v3302_v11 }
 0x277   : > { %v1463_v27 = vpop.f32.mrf.mxu0 }
 0x278   : > { %1721 = vst.msk [vmem:[%s3305_s11 + $0x10] sm:$0xff] %vm1718_vm1, %v1472_v15  ;;  %v1464_v34 = vadd.f32 %v3302_v11, %v1463_v27 }
 0x279   : > { %v2612_v16 = vpop.f32.mrf.mxu0 }
 0x27a   : > { %1719 = vst.msk [vmem:[%s3305_s11] sm:$0xff] %vm1718_vm1, %v1464_v34  ;;  %v1475_v57 = vadd.f32 %v2612_v16, %v3302_v11 }
 0x27b   : > { %v1466_v18 = vpop.f32.mrf.mxu0 }
 0x27c   : > { %1722 = vst.msk [vmem:[%s3305_s11 + $0x18] sm:$0xff] %vm1718_vm1, %v1475_v57  ;;  %v1467_v20 = vadd.f32 %v3302_v11, %v1466_v18 }
 0x27d   : > { %v2615_v21 = vpop.f32.mrf.mxu0 }
 0x27e   : > { %1720 = vst.msk [vmem:[%s3305_s11 + $0x8] sm:$0xff] %vm1718_vm1, %v1467_v20  ;;  %v1488_v23 = vadd.f32 %v2615_v21, %v3302_v11 }
 0x27f   : > { %v1479_v25 = vpop.f32.mrf.mxu0 }
 0x280   : > { %1725 = vst.msk [vmem:[%s3305_s11 + $0x30] sm:$0xff] %vm1718_vm1, %v1488_v23  ;;  %v1480_v22 = vadd.f32 %v3302_v11, %v1479_v25 }
 0x281   : > { %v2616_v26 = vpop.f32.mrf.mxu0 }
 0x282   : > { %1723 = vst.msk [vmem:[%s3305_s11 + $0x20] sm:$0xff] %vm1718_vm1, %v1480_v22  ;;  %v1491_v32 = vadd.f32 %v2616_v26, %v3302_v11 }
 0x283   : > { %v1482_v61 = vpop.f32.mrf.mxu0 }
 0x284   : > { %1726 = vst.msk [vmem:[%s3305_s11 + $0x38] sm:$0xff] %vm1718_vm1, %v1491_v32  ;;  %v1483_v28 = vadd.f32 %v3302_v11, %v1482_v61 }
 0x285   : > { %v2619_v19 = vpop.f32.mrf.mxu0 }
 0x286   : > { %1724 = vst.msk [vmem:[%s3305_s11 + $0x28] sm:$0xff] %vm1718_vm1, %v1483_v28  ;;  %v1504_v7 = vadd.f32 %v2619_v19, %v3302_v11 }
 0x287   : > { %v1495_v29 = vpop.f32.mrf.mxu0 }
 0x288   : > { %1729 = vst.msk [vmem:[%s3305_s11 + $0x50] sm:$0xff] %vm1718_vm1, %v1504_v7  ;;  %v1496_v30 = vadd.f32 %v3302_v11, %v1495_v29 }
 0x289   : > { %v2620_v31 = vpop.f32.mrf.mxu0 }
 0x28a   : > { %1727 = vst.msk [vmem:[%s3305_s11 + $0x40] sm:$0xff] %vm1718_vm1, %v1496_v30  ;;  %v1507_v33 = vadd.f32 %v2620_v31, %v3302_v11 }
 0x28b   : > { %v1498_v35 = vpop.f32.mrf.mxu0 }
 0x28c   : > { %1730 = vst.msk [vmem:[%s3305_s11 + $0x58] sm:$0xff] %vm1718_vm1, %v1507_v33  ;;  %v1499_v36 = vadd.f32 %v3302_v11, %v1498_v35 }
 0x28d   : > { %v2623_v38 = vpop.f32.mrf.mxu0 }
 0x28e   : > { %1728 = vst.msk [vmem:[%s3305_s11 + $0x48] sm:$0xff] %vm1718_vm1, %v1499_v36  ;;  %v1520_v39 = vadd.f32 %v2623_v38, %v3302_v11 }
 0x28f   : > { %v1511_v42 = vpop.f32.mrf.mxu0 }
 0x290   : > { %1733 = vst.msk [vmem:[%s3305_s11 + $0x70] sm:$0xff] %vm1718_vm1, %v1520_v39  ;;  %v1512_v52 = vadd.f32 %v3302_v11, %v1511_v42 }
 0x291   : > { %v2624_v40 = vpop.f32.mrf.mxu0 }
 0x292   : > { %1731 = vst.msk [vmem:[%s3305_s11 + $0x60] sm:$0xff] %vm1718_vm1, %v1512_v52  ;;  %v1523_v17 = vadd.f32 %v2624_v40, %v3302_v11 }
 0x293   : > { %v1514_v41 = vpop.f32.mrf.mxu0 }
 0x294   : > { %1734 = vst.msk [vmem:[%s3305_s11 + $0x78] sm:$0xff] %vm1718_vm1, %v1523_v17  ;;  %v1515_v43 = vadd.f32 %v3302_v11, %v1514_v41 }
 0x295   : > { %v2627_v46 = vpop.f32.mrf.mxu0 }
 0x296   : > { %1732 = vst.msk [vmem:[%s3305_s11 + $0x68] sm:$0xff] %vm1718_vm1, %v1515_v43  ;;  %v1536_v44 = vadd.f32 %v2627_v46, %v3302_v11 }
 0x297   : > { %v1527_v48 = vpop.f32.mrf.mxu0 }
 0x298   : > { %1737 = vst.msk [vmem:[%s3305_s11 + $0x90] sm:$0xff] %vm1718_vm1, %v1536_v44  ;;  %v1528_v4 = vadd.f32 %v3302_v11, %v1527_v48 }
 0x299   : > { %v2628_v49 = vpop.f32.mrf.mxu0 }
 0x29a   : > { %1735 = vst.msk [vmem:[%s3305_s11 + $0x80] sm:$0xff] %vm1718_vm1, %v1528_v4  ;;  %v1539_v50 = vadd.f32 %v2628_v49, %v3302_v11 }
 0x29b   : > { %v1530_v24 = vpop.f32.mrf.mxu0 }
 0x29c   : > { %1738 = vst.msk [vmem:[%s3305_s11 + $0x98] sm:$0xff] %vm1718_vm1, %v1539_v50  ;;  %v1531_v37 = vadd.f32 %v3302_v11, %v1530_v24 }
 0x29d   : > { %v2631_v47 = vpop.f32.mrf.mxu0 }
 0x29e   : > { %1736 = vst.msk [vmem:[%s3305_s11 + $0x88] sm:$0xff] %vm1718_vm1, %v1531_v37  ;;  %v1552_v51 = vadd.f32 %v2631_v47, %v3302_v11 }
 0x29f   : > { %v1543_v53 = vpop.f32.mrf.mxu0 }
 0x2a0   : > { %1741 = vst.msk [vmem:[%s3305_s11 + $0xb0] sm:$0xff] %vm1718_vm1, %v1552_v51  ;;  %v1544_v54 = vadd.f32 %v3302_v11, %v1543_v53 }
 0x2a1   : > { %v2632_v55 = vpop.f32.mrf.mxu0 }
 0x2a2   : > { %1739 = vst.msk [vmem:[%s3305_s11 + $0xa0] sm:$0xff] %vm1718_vm1, %v1544_v54  ;;  %v1555_v56 = vadd.f32 %v2632_v55, %v3302_v11 }
 0x2a3   : > { %v1546_v59 = vpop.f32.mrf.mxu0 }
 0x2a4   : > { %1742 = vst.msk [vmem:[%s3305_s11 + $0xb8] sm:$0xff] %vm1718_vm1, %v1555_v56  ;;  %v1547_v60 = vadd.f32 %v3302_v11, %v1546_v59 }
 0x2a5   : > { %v2635_v62 = vpop.f32.mrf.mxu0 }
 0x2a6   : > { %1740 = vst.msk [vmem:[%s3305_s11 + $0xa8] sm:$0xff] %vm1718_vm1, %v1547_v60  ;;  %v1568_v63 = vadd.f32 %v2635_v62, %v3302_v11 }
 0x2a7   : > { %v1559_v0 = vpop.f32.mrf.mxu0 }
 0x2a8   : > { %1745 = vst.msk [vmem:[%s3305_s11 + $0xd0] sm:$0xff] %vm1718_vm1, %v1568_v63  ;;  %v1560_v45 = vadd.f32 %v3302_v11, %v1559_v0 }
 0x2a9   : > { %v2636_v1 = vpop.f32.mrf.mxu0 }
 0x2aa   : > { %1743 = vst.msk [vmem:[%s3305_s11 + $0xc0] sm:$0xff] %vm1718_vm1, %v1560_v45  ;;  %v1571_v2 = vadd.f32 %v2636_v1, %v3302_v11 }
 0x2ab   : > { %v1562_v58 = vpop.f32.mrf.mxu0 }
 0x2ac   : > { %1746 = vst.msk [vmem:[%s3305_s11 + $0xd8] sm:$0xff] %vm1718_vm1, %v1571_v2  ;;  %v1563_v14 = vadd.f32 %v3302_v11, %v1562_v58 }
 0x2ad   : > { %v2639_v3 = vpop.f32.mrf.mxu0 }
 0x2ae   : > { %1744 = vst.msk [vmem:[%s3305_s11 + $0xc8] sm:$0xff] %vm1718_vm1, %v1563_v14  ;;  %v1584_v5 = vadd.f32 %v2639_v3, %v3302_v11 }
 0x2af   : > { %v1575_v12 = vpop.f32.mrf.mxu0 }
 0x2b0   : > { %1749 = vst.msk [vmem:[%s3305_s11 + $0xf0] sm:$0xff] %vm1718_vm1, %v1584_v5  ;;  %v1576_v6 = vadd.f32 %v3302_v11, %v1575_v12 }
 0x2b1   : > { %v2640_v8 = vpop.f32.mrf.mxu0 }
 0x2b2   : > { %1747 = vst.msk [vmem:[%s3305_s11 + $0xe0] sm:$0xff] %vm1718_vm1, %v1576_v6  ;;  %v1587_v9 = vadd.f32 %v2640_v8, %v3302_v11 }
 0x2b3   : > { %v1578_v10 = vpop.f32.mrf.mxu0 }
 0x2b4   : > { %1750 = vst.msk [vmem:[%s3305_s11 + $0xf8] sm:$0xff] %vm1718_vm1, %v1587_v9  ;;  %v1579_v13 = vadd.f32 %v3302_v11, %v1578_v10 }
 0x2b5   : > { %v2643_v15 = vpop.f32.mrf.mxu0 }
 0x2b6   : > { %1748 = vst.msk [vmem:[%s3305_s11 + $0xe8] sm:$0xff] %vm1718_vm1, %v1579_v13  ;;  %v1600_v27 = vadd.f32 %v2643_v15, %v3302_v11 }
 0x2b7   : > { %v1591_v34 = vpop.f32.mrf.mxu0 }
 0x2b8   : > { %1753 = vst.msk [vmem:[%s3305_s11 + $0x110] sm:$0xff] %vm1718_vm1, %v1600_v27  ;;  %v1592_v16 = vadd.f32 %v3302_v11, %v1591_v34 }
 0x2b9   : > { %v2644_v57 = vpop.f32.mrf.mxu0 }
 0x2ba   : > { %1751 = vst.msk [vmem:[%s3305_s11 + $0x100] sm:$0xff] %vm1718_vm1, %v1592_v16  ;;  %v1603_v18 = vadd.f32 %v2644_v57, %v3302_v11 }
 0x2bb   : > { %v1594_v20 = vpop.f32.mrf.mxu0 }
 0x2bc   : > { %1754 = vst.msk [vmem:[%s3305_s11 + $0x118] sm:$0xff] %vm1718_vm1, %v1603_v18  ;;  %v1595_v21 = vadd.f32 %v3302_v11, %v1594_v20 }
 0x2bd   : > { %v2647_v23 = vpop.f32.mrf.mxu0 }
 0x2be   : > { %1752 = vst.msk [vmem:[%s3305_s11 + $0x108] sm:$0xff] %vm1718_vm1, %v1595_v21  ;;  %v1616_v25 = vadd.f32 %v2647_v23, %v3302_v11 }
 0x2bf   : > { %v1607_v22 = vpop.f32.mrf.mxu0 }
 0x2c0   : > { %1757 = vst.msk [vmem:[%s3305_s11 + $0x130] sm:$0xff] %vm1718_vm1, %v1616_v25  ;;  %v1608_v26 = vadd.f32 %v3302_v11, %v1607_v22 }
 0x2c1   : > { %v2648_v32 = vpop.f32.mrf.mxu0 }
 0x2c2   : > { %1755 = vst.msk [vmem:[%s3305_s11 + $0x120] sm:$0xff] %vm1718_vm1, %v1608_v26  ;;  %v1619_v61 = vadd.f32 %v2648_v32, %v3302_v11 }
 0x2c3   : > { %v1610_v28 = vpop.f32.mrf.mxu0 }
 0x2c4   : > { %1758 = vst.msk [vmem:[%s3305_s11 + $0x138] sm:$0xff] %vm1718_vm1, %v1619_v61  ;;  %v1611_v19 = vadd.f32 %v3302_v11, %v1610_v28 }
 0x2c5   : > { %v2651_v7 = vpop.f32.mrf.mxu0 }
 0x2c6   : > { %1756 = vst.msk [vmem:[%s3305_s11 + $0x128] sm:$0xff] %vm1718_vm1, %v1611_v19  ;;  %v1632_v29 = vadd.f32 %v2651_v7, %v3302_v11 }
 0x2c7   : > { %v1623_v30 = vpop.f32.mrf.mxu0 }
 0x2c8   : > { %1761 = vst.msk [vmem:[%s3305_s11 + $0x150] sm:$0xff] %vm1718_vm1, %v1632_v29  ;;  %v1624_v31 = vadd.f32 %v3302_v11, %v1623_v30 }
 0x2c9   : > { %v2652_v33 = vpop.f32.mrf.mxu0 }
 0x2ca   : > { %1759 = vst.msk [vmem:[%s3305_s11 + $0x140] sm:$0xff] %vm1718_vm1, %v1624_v31  ;;  %v1635_v35 = vadd.f32 %v2652_v33, %v3302_v11 }
 0x2cb   : > { %v1626_v36 = vpop.f32.mrf.mxu0 }
 0x2cc   : > { %1762 = vst.msk [vmem:[%s3305_s11 + $0x158] sm:$0xff] %vm1718_vm1, %v1635_v35  ;;  %v1627_v38 = vadd.f32 %v3302_v11, %v1626_v36 }
 0x2cd   : > { %v2655_v39 = vpop.f32.mrf.mxu0 }
 0x2ce   : > { %1760 = vst.msk [vmem:[%s3305_s11 + $0x148] sm:$0xff] %vm1718_vm1, %v1627_v38  ;;  %v1648_v42 = vadd.f32 %v2655_v39, %v3302_v11 }
 0x2cf   : > { %v1639_v52 = vpop.f32.mrf.mxu0 }
 0x2d0   : > { %1765 = vst.msk [vmem:[%s3305_s11 + $0x170] sm:$0xff] %vm1718_vm1, %v1648_v42  ;;  %v1640_v40 = vadd.f32 %v3302_v11, %v1639_v52 }
 0x2d1   : > { %v2656_v17 = vpop.f32.mrf.mxu0 }
 0x2d2   : > { %1763 = vst.msk [vmem:[%s3305_s11 + $0x160] sm:$0xff] %vm1718_vm1, %v1640_v40  ;;  %v1651_v41 = vadd.f32 %v2656_v17, %v3302_v11 }
 0x2d3   : > { %v1642_v43 = vpop.f32.mrf.mxu0 }
 0x2d4   : > { %1766 = vst.msk [vmem:[%s3305_s11 + $0x178] sm:$0xff] %vm1718_vm1, %v1651_v41  ;;  %v1643_v46 = vadd.f32 %v3302_v11, %v1642_v43 }
 0x2d5   : > { %v2659_v44 = vpop.f32.mrf.mxu0 }
 0x2d6   : > { %1764 = vst.msk [vmem:[%s3305_s11 + $0x168] sm:$0xff] %vm1718_vm1, %v1643_v46  ;;  %v1664_v48 = vadd.f32 %v2659_v44, %v3302_v11 }
 0x2d7   : > { %v1655_v4 = vpop.f32.mrf.mxu0 }
 0x2d8   : > { %1769 = vst.msk [vmem:[%s3305_s11 + $0x190] sm:$0xff] %vm1718_vm1, %v1664_v48  ;;  %v1656_v49 = vadd.f32 %v3302_v11, %v1655_v4 }
 0x2d9   : > { %v2660_v50 = vpop.f32.mrf.mxu0 }
 0x2da   : > { %1767 = vst.msk [vmem:[%s3305_s11 + $0x180] sm:$0xff] %vm1718_vm1, %v1656_v49  ;;  %v1667_v24 = vadd.f32 %v2660_v50, %v3302_v11 }
 0x2db   : > { %v1658_v37 = vpop.f32.mrf.mxu0 }
 0x2dc   : > { %1770 = vst.msk [vmem:[%s3305_s11 + $0x198] sm:$0xff] %vm1718_vm1, %v1667_v24  ;;  %v1659_v47 = vadd.f32 %v3302_v11, %v1658_v37 }
 0x2dd   : > { %v2663_v51 = vpop.f32.mrf.mxu0 }
 0x2de   : > { %1768 = vst.msk [vmem:[%s3305_s11 + $0x188] sm:$0xff] %vm1718_vm1, %v1659_v47  ;;  %v1680_v53 = vadd.f32 %v2663_v51, %v3302_v11 }
 0x2df   : > { %v1671_v54 = vpop.f32.mrf.mxu0 }
 0x2e0   : > { %1773 = vst.msk [vmem:[%s3305_s11 + $0x1b0] sm:$0xff] %vm1718_vm1, %v1680_v53  ;;  %v1672_v55 = vadd.f32 %v3302_v11, %v1671_v54 }
 0x2e1   : > { %v2664_v56 = vpop.f32.mrf.mxu0 }
 0x2e2   : > { %1771 = vst.msk [vmem:[%s3305_s11 + $0x1a0] sm:$0xff] %vm1718_vm1, %v1672_v55  ;;  %v1683_v59 = vadd.f32 %v2664_v56, %v3302_v11 }
 0x2e3   : > { %v1674_v60 = vpop.f32.mrf.mxu0 }
 0x2e4   : > { %1774 = vst.msk [vmem:[%s3305_s11 + $0x1b8] sm:$0xff] %vm1718_vm1, %v1683_v59  ;;  %v1675_v62 = vadd.f32 %v3302_v11, %v1674_v60 }
 0x2e5   : > { %v2667_v63 = vpop.f32.mrf.mxu0 }
 0x2e6   : > { %1772 = vst.msk [vmem:[%s3305_s11 + $0x1a8] sm:$0xff] %vm1718_vm1, %v1675_v62  ;;  %v1696_v0 = vadd.f32 %v2667_v63, %v3302_v11 }
 0x2e7   : > { %v1687_v45 = vpop.f32.mrf.mxu0 }
 0x2e8   : > { %1777 = vst.msk [vmem:[%s3305_s11 + $0x1d0] sm:$0xff] %vm1718_vm1, %v1696_v0  ;;  %v1688_v1 = vadd.f32 %v3302_v11, %v1687_v45 }
 0x2e9   : > { %v2668_v2 = vpop.f32.mrf.mxu0 }
 0x2ea   : > { %1775 = vst.msk [vmem:[%s3305_s11 + $0x1c0] sm:$0xff] %vm1718_vm1, %v1688_v1  ;;  %v1699_v58 = vadd.f32 %v2668_v2, %v3302_v11 }
 0x2eb   : > { %v1690_v14 = vpop.f32.mrf.mxu0 }
 0x2ec   : > { %1778 = vst.msk [vmem:[%s3305_s11 + $0x1d8] sm:$0xff] %vm1718_vm1, %v1699_v58  ;;  %v1691_v3 = vadd.f32 %v3302_v11, %v1690_v14 }
 0x2ed   : > { %v2671_v5 = vpop.f32.mrf.mxu0 }
 0x2ee   : > { %1776 = vst.msk [vmem:[%s3305_s11 + $0x1c8] sm:$0xff] %vm1718_vm1, %v1691_v3  ;;  %v1712_v12 = vadd.f32 %v2671_v5, %v3302_v11 }
 0x2ef   : > { %v1703_v6 = vpop.f32.mrf.mxu0 }
 0x2f0   : > { %1781 = vst.msk [vmem:[%s3305_s11 + $0x1f0] sm:$0xff] %vm1718_vm1, %v1712_v12  ;;  %v1704_v8 = vadd.f32 %v3302_v11, %v1703_v6 }
 0x2f1   : > { %v2672_v9 = vpop.f32.mrf.mxu0 }
 0x2f2   : > { %1779 = vst.msk [vmem:[%s3305_s11 + $0x1e0] sm:$0xff] %vm1718_vm1, %v1704_v8  ;;  %v1715_v10 = vadd.f32 %v2672_v9, %v3302_v11  ;;  %1789 = sbr.rel (!%p2936_p4) target bundleno = 823 (0x337), region = 52 }
 0x2f3   : > { %v1706_v13 = vpop.f32.mrf.mxu0 }
 0x2f4   : > { %1782 = vst.msk [vmem:[%s3305_s11 + $0x1f8] sm:$0xff] %vm1718_vm1, %v1715_v10  ;;  %v1707_v15 = vadd.f32 %v3302_v11, %v1706_v13 }
 0x2f6   : > { %1780 = vst.msk [vmem:[%s3305_s11 + $0x1e8] sm:$0xff] %vm1718_vm1, %v1707_v15 }
 0x2f7   : > { %s3722_s24 = smov (!%p1792_p8, %s1791_s24), 64 }
 0x2f8   : > { %s2313_s17 = sshll.u32 %s3722_s24, 7 }
 0x2f9   : > { %p2316_p9 = scmp.eq.s32.totalorder %s2313_s17, 0 }
 0x2fa   : > { %s3511_s18 = sshrl.u32 (!%p2316_p9), %s3722_s24, 6 }
 0x2fb   : > { %1800 = sbr.rel (%p2316_p9) target bundleno = 823 (0x337), region = 56  ;;  %p2317_p10 = scmp.le.s32.totalorder (!%p2316_p9), %s3511_s18, 0 }
 0x300   : > { %2207 = sbr.rel (%p2317_p10) target bundleno = 806 (0x326), region = 132  ;;  %s3713_s27 = smov (!%p2317_p10), %s3505_s16 }
 0x301   : > { %s3714_s9 = smov (!%p2317_p10), %s3305_s11  ;;  %s3520_s12 = smov (!%p2317_p10), 0  }
 0x302   : > { %s3522_s19 = smov (!%p2317_p10), 0  }
 0x305 LB: >> { %v1989_v11 = vld [vmem:[%s2845_s9] sm:$0xff]  ;;  %v1991_v27 = vld [vmem:[%s2845_s9 + $0x8] sm:$0xff]  ;;  %v1993_v34 = vld [vmem:[%s2845_s9 + $0x10] sm:$0xff]  ;;  %s2117_s20 = sadd.s32 1, %s2849_s12  ;;  %s1983_s19 = sadd.s32 1, %s2853_s19   ;;  %s2853_s19 = sphi %s3522_s19, %s1983_s19   ;;  %s2849_s12 = sphi %s3520_s12, %s3717_s12   ;;  %s2845_s9 = sphi %s3714_s9, %s3716_s9   ;;  %s2841_s27 = sphi %s3713_s27, %s3715_s27  }
 0x306   : >> { %1990 = vst [vmem:[%s2841_s27] sm:$0xff] %v1989_v11  ;;  %1992 = vst [vmem:[%s2841_s27 + $0x8] sm:$0xff] %v1991_v27  ;;  %v1995_v16 = vld [vmem:[%s2845_s9 + $0x18] sm:$0xff]  ;;  %v1997_v57 = vld [vmem:[%s2845_s9 + $0x20] sm:$0xff]  ;;  %p2118_p11 = scmp.ge.s32.totalorder %s2117_s20, %s3511_s18  ;;  %p1982_p12 = scmp.ge.s32.totalorder %s1983_s19, %s3511_s18 }
 0x307   : >> { %1994 = vst [vmem:[%s2841_s27 + $0x10] sm:$0xff] %v1993_v34  ;;  %v1999_v18 = vld [vmem:[%s2845_s9 + $0x28] sm:$0xff]  ;;  %1996 = vst [vmem:[%s2841_s27 + $0x18] sm:$0xff] %v1995_v16  ;;  %v2001_v20 = vld [vmem:[%s2845_s9 + $0x30] sm:$0xff] }
 0x308   : >> { %1998 = vst [vmem:[%s2841_s27 + $0x20] sm:$0xff] %v1997_v57  ;;  %2000 = vst [vmem:[%s2841_s27 + $0x28] sm:$0xff] %v1999_v18  ;;  %v2003_v21 = vld [vmem:[%s2845_s9 + $0x38] sm:$0xff]  ;;  %v2005_v23 = vld [vmem:[%s2845_s9 + $0x40] sm:$0xff]  ;;  %s3724_s20 = smov (%p2118_p11, %s2117_s20), 0 }
 0x309   : >> { %2002 = vst [vmem:[%s2841_s27 + $0x30] sm:$0xff] %v2001_v20  ;;  %2004 = vst [vmem:[%s2841_s27 + $0x38] sm:$0xff] %v2003_v21  ;;  %v2007_v25 = vld [vmem:[%s2845_s9 + $0x48] sm:$0xff]  ;;  %v2009_v22 = vld [vmem:[%s2845_s9 + $0x50] sm:$0xff]  ;;  %s2318_s22 = sshll.u32 %s3724_s20, 9  ;;  %s3717_s12 = smov %s3724_s20 }
 0x30a   : >> { %2006 = vst [vmem:[%s2841_s27 + $0x40] sm:$0xff] %v2005_v23  ;;  %v2011_v26 = vld [vmem:[%s2845_s9 + $0x58] sm:$0xff]  ;;  %2008 = vst [vmem:[%s2841_s27 + $0x48] sm:$0xff] %v2007_v25  ;;  %v2013_v32 = vld [vmem:[%s2845_s9 + $0x60] sm:$0xff]  ;;  %s3578_s21 = scalar_lea.vmem %s3305_s11, %s2318_s22 [#allocation2]   ;;  %s3581_s23 = scalar_lea.vmem %s3505_s16, %s2318_s22  }
 0x30b   : >> { %2010 = vst [vmem:[%s2841_s27 + $0x50] sm:$0xff] %v2009_v22  ;;  %2012 = vst [vmem:[%s2841_s27 + $0x58] sm:$0xff] %v2011_v26  ;;  %v2015_v61 = vld [vmem:[%s2845_s9 + $0x68] sm:$0xff]  ;;  %v2017_v28 = vld [vmem:[%s2845_s9 + $0x70] sm:$0xff] }
 0x30c   : >> { %2014 = vst [vmem:[%s2841_s27 + $0x60] sm:$0xff] %v2013_v32  ;;  %2016 = vst [vmem:[%s2841_s27 + $0x68] sm:$0xff] %v2015_v61  ;;  %v2019_v19 = vld [vmem:[%s2845_s9 + $0x78] sm:$0xff]  ;;  %v2021_v7 = vld [vmem:[%s2845_s9 + $0x80] sm:$0xff] }
 0x30d   : >> { %2018 = vst [vmem:[%s2841_s27 + $0x70] sm:$0xff] %v2017_v28  ;;  %v2023_v29 = vld [vmem:[%s2845_s9 + $0x88] sm:$0xff]  ;;  %2020 = vst [vmem:[%s2841_s27 + $0x78] sm:$0xff] %v2019_v19  ;;  %v2025_v30 = vld [vmem:[%s2845_s9 + $0x90] sm:$0xff] }
 0x30e   : >> { %2022 = vst [vmem:[%s2841_s27 + $0x80] sm:$0xff] %v2021_v7  ;;  %2024 = vst [vmem:[%s2841_s27 + $0x88] sm:$0xff] %v2023_v29  ;;  %v2027_v31 = vld [vmem:[%s2845_s9 + $0x98] sm:$0xff]  ;;  %v2029_v33 = vld [vmem:[%s2845_s9 + $0xa0] sm:$0xff] }
 0x30f   : >> { %2026 = vst [vmem:[%s2841_s27 + $0x90] sm:$0xff] %v2025_v30  ;;  %2028 = vst [vmem:[%s2841_s27 + $0x98] sm:$0xff] %v2027_v31  ;;  %v2031_v35 = vld [vmem:[%s2845_s9 + $0xa8] sm:$0xff]  ;;  %v2033_v36 = vld [vmem:[%s2845_s9 + $0xb0] sm:$0xff] }
 0x310   : >> { %2030 = vst [vmem:[%s2841_s27 + $0xa0] sm:$0xff] %v2029_v33  ;;  %v2035_v38 = vld [vmem:[%s2845_s9 + $0xb8] sm:$0xff]  ;;  %2032 = vst [vmem:[%s2841_s27 + $0xa8] sm:$0xff] %v2031_v35  ;;  %v2037_v39 = vld [vmem:[%s2845_s9 + $0xc0] sm:$0xff] }
 0x311   : >> { %2034 = vst [vmem:[%s2841_s27 + $0xb0] sm:$0xff] %v2033_v36  ;;  %2036 = vst [vmem:[%s2841_s27 + $0xb8] sm:$0xff] %v2035_v38  ;;  %v2039_v42 = vld [vmem:[%s2845_s9 + $0xc8] sm:$0xff]  ;;  %v2041_v52 = vld [vmem:[%s2845_s9 + $0xd0] sm:$0xff] }
 0x312   : >> { %2038 = vst [vmem:[%s2841_s27 + $0xc0] sm:$0xff] %v2037_v39  ;;  %2040 = vst [vmem:[%s2841_s27 + $0xc8] sm:$0xff] %v2039_v42  ;;  %v2043_v40 = vld [vmem:[%s2845_s9 + $0xd8] sm:$0xff]  ;;  %v2045_v17 = vld [vmem:[%s2845_s9 + $0xe0] sm:$0xff] }
 0x313   : >> { %2042 = vst [vmem:[%s2841_s27 + $0xd0] sm:$0xff] %v2041_v52  ;;  %v2047_v41 = vld [vmem:[%s2845_s9 + $0xe8] sm:$0xff]  ;;  %2044 = vst [vmem:[%s2841_s27 + $0xd8] sm:$0xff] %v2043_v40  ;;  %v2049_v43 = vld [vmem:[%s2845_s9 + $0xf0] sm:$0xff] }
 0x314   : >> { %2046 = vst [vmem:[%s2841_s27 + $0xe0] sm:$0xff] %v2045_v17  ;;  %2048 = vst [vmem:[%s2841_s27 + $0xe8] sm:$0xff] %v2047_v41  ;;  %v2051_v46 = vld [vmem:[%s2845_s9 + $0xf8] sm:$0xff]  ;;  %v2053_v44 = vld [vmem:[%s2845_s9 + $0x100] sm:$0xff] }
 0x315   : >> { %2050 = vst [vmem:[%s2841_s27 + $0xf0] sm:$0xff] %v2049_v43  ;;  %2052 = vst [vmem:[%s2841_s27 + $0xf8] sm:$0xff] %v2051_v46  ;;  %v2055_v48 = vld [vmem:[%s2845_s9 + $0x108] sm:$0xff]  ;;  %v2057_v4 = vld [vmem:[%s2845_s9 + $0x110] sm:$0xff] }
 0x316   : >> { %2054 = vst [vmem:[%s2841_s27 + $0x100] sm:$0xff] %v2053_v44  ;;  %v2059_v49 = vld [vmem:[%s2845_s9 + $0x118] sm:$0xff]  ;;  %2056 = vst [vmem:[%s2841_s27 + $0x108] sm:$0xff] %v2055_v48  ;;  %v2061_v50 = vld [vmem:[%s2845_s9 + $0x120] sm:$0xff] }
 0x317   : >> { %2058 = vst [vmem:[%s2841_s27 + $0x110] sm:$0xff] %v2057_v4  ;;  %2060 = vst [vmem:[%s2841_s27 + $0x118] sm:$0xff] %v2059_v49  ;;  %v2063_v24 = vld [vmem:[%s2845_s9 + $0x128] sm:$0xff]  ;;  %v2065_v37 = vld [vmem:[%s2845_s9 + $0x130] sm:$0xff] }
 0x318   : >> { %2062 = vst [vmem:[%s2841_s27 + $0x120] sm:$0xff] %v2061_v50  ;;  %2064 = vst [vmem:[%s2841_s27 + $0x128] sm:$0xff] %v2063_v24  ;;  %v2067_v47 = vld [vmem:[%s2845_s9 + $0x138] sm:$0xff]  ;;  %v2069_v51 = vld [vmem:[%s2845_s9 + $0x140] sm:$0xff] }
 0x319   : >> { %2066 = vst [vmem:[%s2841_s27 + $0x130] sm:$0xff] %v2065_v37  ;;  %v2071_v53 = vld [vmem:[%s2845_s9 + $0x148] sm:$0xff]  ;;  %2068 = vst [vmem:[%s2841_s27 + $0x138] sm:$0xff] %v2067_v47  ;;  %v2073_v54 = vld [vmem:[%s2845_s9 + $0x150] sm:$0xff] }
 0x31a   : >> { %2070 = vst [vmem:[%s2841_s27 + $0x140] sm:$0xff] %v2069_v51  ;;  %2072 = vst [vmem:[%s2841_s27 + $0x148] sm:$0xff] %v2071_v53  ;;  %v2075_v55 = vld [vmem:[%s2845_s9 + $0x158] sm:$0xff]  ;;  %v2077_v56 = vld [vmem:[%s2845_s9 + $0x160] sm:$0xff] }
 0x31b   : >> { %2074 = vst [vmem:[%s2841_s27 + $0x150] sm:$0xff] %v2073_v54  ;;  %2076 = vst [vmem:[%s2841_s27 + $0x158] sm:$0xff] %v2075_v55  ;;  %v2079_v59 = vld [vmem:[%s2845_s9 + $0x168] sm:$0xff]  ;;  %v2081_v60 = vld [vmem:[%s2845_s9 + $0x170] sm:$0xff] }
 0x31c   : >> { %2078 = vst [vmem:[%s2841_s27 + $0x160] sm:$0xff] %v2077_v56  ;;  %v2083_v62 = vld [vmem:[%s2845_s9 + $0x178] sm:$0xff]  ;;  %2080 = vst [vmem:[%s2841_s27 + $0x168] sm:$0xff] %v2079_v59  ;;  %v2085_v63 = vld [vmem:[%s2845_s9 + $0x180] sm:$0xff] }
 0x31d   : >> { %2082 = vst [vmem:[%s2841_s27 + $0x170] sm:$0xff] %v2081_v60  ;;  %2084 = vst [vmem:[%s2841_s27 + $0x178] sm:$0xff] %v2083_v62  ;;  %v2087_v0 = vld [vmem:[%s2845_s9 + $0x188] sm:$0xff]  ;;  %v2089_v45 = vld [vmem:[%s2845_s9 + $0x190] sm:$0xff] }
 0x31e   : >> { %2086 = vst [vmem:[%s2841_s27 + $0x180] sm:$0xff] %v2085_v63  ;;  %2088 = vst [vmem:[%s2841_s27 + $0x188] sm:$0xff] %v2087_v0  ;;  %v2091_v1 = vld [vmem:[%s2845_s9 + $0x198] sm:$0xff]  ;;  %v2093_v2 = vld [vmem:[%s2845_s9 + $0x1a0] sm:$0xff] }
 0x31f   : >> { %2090 = vst [vmem:[%s2841_s27 + $0x190] sm:$0xff] %v2089_v45  ;;  %v2095_v58 = vld [vmem:[%s2845_s9 + $0x1a8] sm:$0xff]  ;;  %2092 = vst [vmem:[%s2841_s27 + $0x198] sm:$0xff] %v2091_v1  ;;  %v2097_v14 = vld [vmem:[%s2845_s9 + $0x1b0] sm:$0xff] }
 0x320   : >> { %2094 = vst [vmem:[%s2841_s27 + $0x1a0] sm:$0xff] %v2093_v2  ;;  %2096 = vst [vmem:[%s2841_s27 + $0x1a8] sm:$0xff] %v2095_v58  ;;  %v2099_v3 = vld [vmem:[%s2845_s9 + $0x1b8] sm:$0xff]  ;;  %v2101_v5 = vld [vmem:[%s2845_s9 + $0x1c0] sm:$0xff] }
 0x321   : >> { %2098 = vst [vmem:[%s2841_s27 + $0x1b0] sm:$0xff] %v2097_v14  ;;  %2100 = vst [vmem:[%s2841_s27 + $0x1b8] sm:$0xff] %v2099_v3  ;;  %v2103_v12 = vld [vmem:[%s2845_s9 + $0x1c8] sm:$0xff]  ;;  %v2105_v6 = vld [vmem:[%s2845_s9 + $0x1d0] sm:$0xff]  ;;  %1985 = sbr.rel (!%p1982_p12) target bundleno = 773 (0x305), region = 138 }
 0x322   : >> { %2102 = vst [vmem:[%s2841_s27 + $0x1c0] sm:$0xff] %v2101_v5  ;;  %v2107_v8 = vld [vmem:[%s2845_s9 + $0x1d8] sm:$0xff]  ;;  %2104 = vst [vmem:[%s2841_s27 + $0x1c8] sm:$0xff] %v2103_v12  ;;  %v2109_v9 = vld [vmem:[%s2845_s9 + $0x1e0] sm:$0xff] }
 0x323   : >> { %2106 = vst [vmem:[%s2841_s27 + $0x1d0] sm:$0xff] %v2105_v6  ;;  %2108 = vst [vmem:[%s2841_s27 + $0x1d8] sm:$0xff] %v2107_v8  ;;  %v2111_v10 = vld [vmem:[%s2845_s9 + $0x1e8] sm:$0xff]  ;;  %v2113_v13 = vld [vmem:[%s2845_s9 + $0x1f0] sm:$0xff] }
 0x324   : >> { %2110 = vst [vmem:[%s2841_s27 + $0x1e0] sm:$0xff] %v2109_v9  ;;  %2112 = vst [vmem:[%s2841_s27 + $0x1e8] sm:$0xff] %v2111_v10  ;;  %v2115_v15 = vld [vmem:[%s2845_s9 + $0x1f8] sm:$0xff]  ;;  %s3716_s9 = smov %s3578_s21 }
 0x325   : >> { %2114 = vst [vmem:[%s2841_s27 + $0x1f0] sm:$0xff] %v2113_v13  ;;  %2116 = vst [vmem:[%s2841_s27 + $0x1f8] sm:$0xff] %v2115_v15  ;;  %s3715_s27 = smov %s3581_s23 }
 0x326 PF: > { %s3686_s26 = sand.u32 63, %s3722_s24   ;;  %s2329_s29 = sshll.u32 %s3511_s18, 9 }
 0x327   : > { %s2128_s30 = scalar_lea.vmem %s3305_s11, %s2329_s29 [#allocation2]   ;;  %s2130_s10 = scalar_lea.vmem %s3505_s16, %s2329_s29  }
 0x328   : > { %p2323_p13 = scmp.le.s32.totalorder %s3686_s26, 0 }
 0x329   : > { %s2855_s13 = smov (!%p2323_p13), %s2130_s10   ;;  %s2859_s14 = smov (!%p2323_p13), %s2128_s30  }
 0x32a   : > { %2221 = sbr.rel (%p2323_p13) target bundleno = 823 (0x337), region = 143  ;;  %s2863_s15 = smov (!%p2323_p13), 0  }
 0x32b   : > { %s2867_s17 = smov (!%p2323_p13), 0  }
 0x32f LB: >> { %v2140_v11 = vld [vmem:[%s2861_s14] sm:$0xff]  ;;  %s2142_s24 = sadd.s32 1, %s2865_s15  ;;  %s2134_s17 = sadd.s32 1, %s2869_s17   ;;  %s2869_s17 = sphi %s2867_s17, %s2134_s17   ;;  %s2865_s15 = sphi %s2863_s15, %s2864_s15   ;;  %s2861_s14 = sphi %s2859_s14, %s2147_s14   ;;  %s2857_s13 = sphi %s2855_s13, %s2148_s13  }
 0x330   : >> { %2141 = vst [vmem:[%s2857_s13] sm:$0xff] %v2140_v11  ;;  %p2143_p0 = scmp.ge.s32.totalorder %s2142_s24, %s3686_s26  ;;  %p2133_p1 = scmp.ge.s32.totalorder %s2134_s17, %s3686_s26 }
 0x332   : >> { %s3726_s24 = smov (%p2143_p0, %s2142_s24), 0  ;;  %2136 = sbr.rel (!%p2133_p1) target bundleno = 815 (0x32f), region = 149 }
 0x333   : >> { %s2324_s11 = sshll.u32 %s3726_s24, 3  ;;  %s2864_s15 = smov %s3726_s24  }
 0x334   : >> { %s2147_s14 = scalar_lea.vmem %s2128_s30, %s2324_s11 [#allocation2]   ;;  %s2148_s13 = scalar_lea.vmem %s2130_s10, %s2324_s11  }
 0x337 PF: > { %p14_p2 = scmp.ge.s32.totalorder %s2926_s28, 4   ;;  %s3718_s24 = smov %s2833_s25 }
 0x338   : > { %s3719_s25 = smov %s2934_s8  ;;  %s3720_s26 = smov %s2926_s28 }
 0x339   :  { %16 = sbr.rel (!%p14_p2) target bundleno = 2 (0x2), region = 160 }

</bundles_post_ra>
